<compile_context>
chip_gen: v5e
topology: v5e:2x2
jax: 0.10.0
libtpu: 0.0.40
codegen_flags: <defaults>
</compile_context>

<pallas_src>
import numpy as np
import jax
import jax.numpy as jnp
from jax.experimental import pallas as pl
from jax.experimental.pallas import tpu as pltpu


# ----------------------------------------------------------------------- config

MXU_DTYPE = jnp.bfloat16          # MXU operand dtype and activation storage dtype
LANE = 128                        # lane width -> channel padding target
TM_DEFAULT = 512                  # M tile of the conv matmul
TM_STATS = 1024                   # M tile of the BN statistics reduction


def _round_up(x, m):
    return (x + m - 1) // m * m


def _tile_m(m, cap=TM_DEFAULT):
    """Largest M tile <= cap, but keep >= 2 M tiles when possible so the
    'parallel' grid axis can shard across the 2 TensorCores of a v7x chip."""
    half = _round_up(max(1, (m + 1) // 2), 16)
    return max(16, min(cap, half))


_VMEM_LIMIT = None


def _vmem_limit_bytes():
    """Scoped-VMEM request derived from the actual chip (v7x has only 64 MiB)."""
    global _VMEM_LIMIT
    if _VMEM_LIMIT is None:
        limit = 48 * 1024 * 1024
        try:
            cap = getattr(pltpu.get_tpu_info(), "vmem_capacity_bytes", None)
            if cap:
                limit = min(int(cap) * 3 // 4, 100 * 1024 * 1024)
        except Exception:
            pass
        _VMEM_LIMIT = limit
    return _VMEM_LIMIT


# ------------------------------------------------- single-buffering (Buffered(1))

def _copy_kernel(x_ref, o_ref):
    o_ref[...] = x_ref[...]


_SINGLE_BUFFER_OK = None


def _single_buffer_ok():
    """Probe once whether pipeline_mode=pl.Buffered(1) is supported."""
    global _SINGLE_BUFFER_OK
    if _SINGLE_BUFFER_OK is None:
        try:
            spec = pl.BlockSpec((8, 128), lambda i: (0, 0),
                                pipeline_mode=pl.Buffered(1))
            fn = pl.pallas_call(
                _copy_kernel,
                out_shape=jax.ShapeDtypeStruct((8, 128), jnp.float32),
                grid=(1,),
                in_specs=[spec],
                out_specs=pl.BlockSpec((8, 128), lambda i: (0, 0)))
            jax.block_until_ready(fn(jnp.zeros((8, 128), jnp.float32)))
            _SINGLE_BUFFER_OK = True
        except Exception:
            _SINGLE_BUFFER_OK = False
    return _SINGLE_BUFFER_OK


def _resident_spec(block_shape, index_map):
    """BlockSpec for a grid-invariant operand: single-buffer it (no point in
    double-buffering a block whose index never changes) when supported."""
    if _single_buffer_ok():
        try:
            return pl.BlockSpec(block_shape, index_map,
                                pipeline_mode=pl.Buffered(1))
        except Exception:
            pass
    return pl.BlockSpec(block_shape, index_map)


# ---------------------------------------------------------------------- kernels

def _stats_kernel(x_ref, o_ref):
    """Per-channel sum / sum-of-squares accumulated across M tiles.

    x_ref: (tm, C) bf16 activation tile (read bf16, accumulate f32).
    o_ref: (2, 8, C) f32 resident accumulator (slab 0 = sum, slab 1 = sumsq)."""
    @pl.when(pl.program_id(0) == 0)
    def _init():
        o_ref[...] = jnp.zeros_like(o_ref)

    x = x_ref[...].astype(jnp.float32)
    c = x.shape[-1]
    o_ref[0] += jnp.broadcast_to(jnp.sum(x, axis=0, keepdims=True), (8, c))
    o_ref[1] += jnp.broadcast_to(jnp.sum(x * x, axis=0, keepdims=True), (8, c))


def _conv_body(x_ref, w_ref, sc_ref, sh_ref, v_ref, o_ref, acc_ref, r_ref=None):
    """One (M-tile, tap) step of the fused BN+ReLU+conv matmul.

    x_ref  : (1, tm, Kc) bf16 shifted-view tap of the raw conv input
    w_ref  : (T, Kc, Co) bf16 resident weights, one (Kc, Co) slab per tap
    sc/sh  : (T, 1, Kc)  f32  per-tap BN affine (gamma*inv, beta - mean*gamma*inv)
    v_ref  : (1, tm, 1)  f32  per-(tap,row) validity mask (0 on spatial / M padding)
    r_ref  : (tm, Co)    bf16 optional residual, added at the last tap
    o_ref  : (tm, Co)    bf16 output tile (written once, at the last tap)
    acc_ref: (tm, Co)    f32  VMEM accumulator (resident across the tap axis)
    """
    t = pl.program_id(1)

    @pl.when(t == 0)
    def _init():
        acc_ref[...] = jnp.zeros_like(acc_ref)

    # Fused BatchNorm (affine form) + ReLU on the bf16 tap tile; the f32
    # scale/shift promote the elementwise math to f32 (no bf16 VPU on v5e).
    # The mask zeroes spatial-padding taps and M-padding rows.
    a = jnp.maximum(x_ref[0] * sc_ref[t] + sh_ref[t], 0.0) * v_ref[0]
    acc_ref[...] += jnp.dot(a.astype(MXU_DTYPE), w_ref[t],
                            preferred_element_type=jnp.float32)

    @pl.when(t == pl.num_programs(1) - 1)
    def _finalize():
        out = acc_ref[...]
        if r_ref is not None:          # trace-time branch
            out = out + r_ref[...].astype(jnp.float32)
        o_ref[...] = out.astype(o_ref.dtype)


def _conv_kernel(x_ref, w_ref, sc_ref, sh_ref, v_ref, o_ref, acc_ref):
    _conv_body(x_ref, w_ref, sc_ref, sh_ref, v_ref, o_ref, acc_ref)


def _conv_residual_kernel(x_ref, w_ref, sc_ref, sh_ref, v_ref, r_ref, o_ref, acc_ref):
    _conv_body(x_ref, w_ref, sc_ref, sh_ref, v_ref, o_ref, acc_ref, r_ref=r_ref)


# --------------------------------------------------------------------- wrappers

def bn_scale_shift(x2, gamma, beta, eps=1e-5):
    """Training-mode BN statistics via a tiled global reduction.

    x2: (M, C) bf16 activations (unpadded).  Returns per-channel f32
    (scale, shift) so that bn(x) == x*scale + shift (ReLU fused into the conv)."""
    m, c = x2.shape
    c_pad = _round_up(c, LANE)
    tm = min(TM_STATS, _round_up(m, 16))
    mp = _round_up(m, tm)
    xp = jnp.pad(x2, ((0, mp - m), (0, c_pad - c)))   # zero pad: sums stay unbiased

    sums = pl.pallas_call(
        _stats_kernel,
        out_shape=jax.ShapeDtypeStruct((2, 8, c_pad), jnp.float32),
        grid=(mp // tm,),
        in_specs=[pl.BlockSpec((tm, c_pad), lambda i: (i, 0))],
        out_specs=pl.BlockSpec((2, 8, c_pad), lambda i: (0, 0, 0)),
        compiler_params=pltpu.CompilerParams(
            dimension_semantics=("arbitrary",),            # cross-tile accumulation
            vmem_limit_bytes=_vmem_limit_bytes()),
        cost_estimate=pl.CostEstimate(
            flops=3 * mp * c_pad, transcendentals=0,
            bytes_accessed=int(xp.size) * xp.dtype.itemsize + 2 * 8 * c_pad * 4),
    )(xp)

    s = sums[0, 0, :c]
    sq = sums[1, 0, :c]
    mean = s / m
    # NOTE: E[x^2]-E[x]^2 in f32 can cancel for large-mean activations; fine at
    # these scales (a centered second pass / Welford would be safer if they grow).
    var = sq / m - mean * mean                     # biased var (PyTorch training BN)
    inv = jax.lax.rsqrt(var + eps)
    scale = gamma * inv
    shift = beta - mean * scale
    return scale, shift


def fused_conv_matmul(taps, valid, weights, scales, shifts, residual=None, *, tm):
    """out[m] = sum_t relu(taps[t,m]*scales[t]+shifts[t]) * valid[t,m] @ weights[t]
    (+ residual).  Output is bf16 (accumulation stays f32 in VMEM scratch).

    taps    : (T, Mp, Kc) bf16  (Kc, Co multiples of 128 -> lane-dense stores)
    valid   : (T, Mp, 1)  f32   per-(tap, row) validity mask
    weights : (T, Kc, Co) bf16  resident in VMEM for the whole call
    scales, shifts : (T, 1, Kc) f32
    residual: (Mp, Co) bf16 or None
    """
    t_taps, mp, kc = taps.shape
    co = weights.shape[-1]

    in_specs = [
        pl.BlockSpec((1, tm, kc), lambda mi, t: (t, mi, 0)),          # A tile / tap
        _resident_spec((t_taps, kc, co), lambda mi, t: (0, 0, 0)),    # weights
        _resident_spec((t_taps, 1, kc), lambda mi, t: (0, 0, 0)),     # BN scale
        _resident_spec((t_taps, 1, kc), lambda mi, t: (0, 0, 0)),     # BN shift
        pl.BlockSpec((1, tm, 1), lambda mi, t: (t, mi, 0)),           # validity mask
    ]
    args = [taps, weights, scales, shifts, valid]
    kernel = _conv_kernel
    res_bytes = 0
    if residual is not None:
        in_specs.append(pl.BlockSpec((tm, co), lambda mi, t: (mi, 0)))
        args.append(residual)
        kernel = _conv_residual_kernel
        res_bytes = int(residual.size) * residual.dtype.itemsize

    return pl.pallas_call(
        kernel,
        out_shape=jax.ShapeDtypeStruct((mp, co), MXU_DTYPE),
        grid=(mp // tm, t_taps),                   # (parallel M tiles, tap reduction)
        in_specs=in_specs,
        out_specs=pl.BlockSpec((tm, co), lambda mi, t: (mi, 0)),
        scratch_shapes=[pltpu.VMEM((tm, co), jnp.float32)],
        compiler_params=pltpu.CompilerParams(
            dimension_semantics=("parallel", "arbitrary"),
            vmem_limit_bytes=_vmem_limit_bytes()),
        cost_estimate=pl.CostEstimate(
            flops=2 * mp * kc * co * t_taps,
            transcendentals=0,
            bytes_accessed=(int(taps.size) * taps.dtype.itemsize
                            + int(valid.size) * 4
                            + int(weights.size) * weights.dtype.itemsize
                            + mp * co * 2 + res_bytes)),
    )(*args)


# ----------------------------------------------------------- conv "tap" plumbing

def _conv_out_hw(h, w, k, stride, pad):
    return (h + 2 * pad - k) // stride + 1, (w + 2 * pad - k) // stride + 1


def _make_taps(x, stride, pad, k, kc, tm):
    """Shifted/strided bf16 views of x (NHWC) forming the "tap" reduction axis,
    plus an f32 per-(tap, row) validity mask (0 on spatial / M padding).

    Returns (taps (k*k, Mp, kc) bf16, valid (k*k, Mp, 1) f32)."""
    n, h, w, c = x.shape
    ho, wo = _conv_out_hw(h, w, k, stride, pad)
    xp = jnp.pad(x, ((0, 0), (pad, pad), (pad, pad), (0, kc - c)))
    vp = jnp.pad(jnp.ones((n, h, w, 1), jnp.float32),
                 ((0, 0), (pad, pad), (pad, pad), (0, 0)))
    taps, valid = [], []
    for i in range(k):
        for j in range(k):
            sl = (slice(None),
                  slice(i, i + (ho - 1) * stride + 1, stride),
                  slice(j, j + (wo - 1) * stride + 1, stride),
                  slice(None))
            taps.append(xp[sl].reshape(n * ho * wo, kc))
            valid.append(vp[sl].reshape(n * ho * wo, 1))
    m = n * ho * wo
    mp = _round_up(m, tm)
    taps = jnp.pad(jnp.stack(taps, axis=0), ((0, 0), (0, mp - m), (0, 0)))
    valid = jnp.pad(jnp.stack(valid, axis=0), ((0, 0), (0, mp - m), (0, 0)))
    return taps, valid


def _pad_vec(v, n):
    return jnp.pad(v, (0, n - v.shape[0]))


def _pad_weight(w, kc, co):
    """(T, Cin, Cout) f32 -> (T, kc, co) bf16 (zero-padded, lane-dense)."""
    return jnp.pad(w, ((0, 0), (0, kc - w.shape[1]),
                       (0, co - w.shape[2]))).astype(MXU_DTYPE)


def _tap_affine(scale, shift, kc, t):
    s = jnp.tile(_pad_vec(scale, kc)[None, None, :], (t, 1, 1))
    h = jnp.tile(_pad_vec(shift, kc)[None, None, :], (t, 1, 1))
    return s, h


# ------------------------------------------------------------------ basic block

def basic_block(x, p, stride):
    """One WRN BasicBlock (NHWC, bf16 activations), built from two fused
    BN+ReLU+conv Pallas matmuls."""
    n, hi, wi, cin = x.shape
    cout = p["conv1_w"].shape[-1]
    equal_in_out = (cin == cout)
    if equal_in_out and stride != 1:
        raise ValueError("identity shortcut requires stride == 1 when Cin == Cout")
    co_pad = _round_up(cout, LANE)

    # BN1 global batch statistics (tiled reduction); the normalize + ReLU is
    # fused into the conv kernels below, so relu(bn1(x)) never round-trips HBM.
    sc1, sh1 = bn_scale_shift(x.reshape(-1, cin), p["bn1_g"], p["bn1_b"])

    # conv1 = conv3x3(relu(bn1(x)), stride)
    ho, wo = _conv_out_hw(hi, wi, 3, stride, 1)
    m1 = n * ho * wo
    tm = _tile_m(m1)
    kc1 = _round_up(cin, LANE)
    taps1, valid1 = _make_taps(x, stride, 1, 3, kc1, tm)
    w1 = _pad_weight(p["conv1_w"].reshape(9, cin, cout), kc1, co_pad)
    s1t, h1t = _tap_affine(sc1, sh1, kc1, 9)
    out1p = fused_conv_matmul(taps1, valid1, w1, s1t, h1t, tm=tm)
    out1 = out1p[:m1, :cout].reshape(n, ho, wo, cout)          # bf16

    # BN2 statistics over conv1's (bf16) output.
    sc2, sh2 = bn_scale_shift(out1.reshape(-1, cout), p["bn2_g"], p["bn2_b"])

    # TODO(synk): F.dropout (training-mode RNG) not implemented; dropRate=0.0 -> identity.

    # conv2 = conv3x3(relu(bn2(out1)), 1) + residual; the 1x1 shortcut conv is
    # fused in as a 10th tap of the same accumulating matmul when Cin != Cout.
    if equal_in_out:
        kc2 = _round_up(cout, LANE)
        taps2, valid2 = _make_taps(out1, 1, 1, 3, kc2, tm)
        w2 = _pad_weight(p["conv2_w"].reshape(9, cout, cout), kc2, co_pad)
        s2t, h2t = _tap_affine(sc2, sh2, kc2, 9)
        mp = taps2.shape[1]
        res = jnp.pad(x.reshape(m1, cin), ((0, mp - m1), (0, co_pad - cin)))
        out2p = fused_conv_matmul(taps2, valid2, w2, s2t, h2t, residual=res, tm=tm)
    else:
        kc2 = _round_up(max(cin, cout), LANE)
        taps2, valid2 = _make_taps(out1, 1, 1, 3, kc2, tm)     # 9 taps of out1 (BN2)
        tapsc, validc = _make_taps(x, stride, 0, 1, kc2, tm)   # 1 tap of raw x (BN1)
        taps_all = jnp.concatenate([taps2, tapsc], axis=0)
        valid_all = jnp.concatenate([valid2, validc], axis=0)
        w2 = _pad_weight(p["conv2_w"].reshape(9, cout, cout), kc2, co_pad)
        wsc = _pad_weight(p["conv_sc_w"].reshape(1, cin, cout), kc2, co_pad)
        w_all = jnp.concatenate([w2, wsc], axis=0)
        s2t, h2t = _tap_affine(sc2, sh2, kc2, 9)
        s_all = jnp.concatenate([s2t, _pad_vec(sc1, kc2)[None, None, :]], axis=0)
        h_all = jnp.concatenate([h2t, _pad_vec(sh1, kc2)[None, None, :]], axis=0)
        out2p = fused_conv_matmul(taps_all, valid_all, w_all, s_all, h_all, tm=tm)

    return out2p[:m1, :cout].reshape(n, ho, wo, cout)          # bf16


def ordered_network_block(x_nchw, params_list, stride, drop_rate=0.0):
    """Forward of OrderedNetworkBlock.  Input/output NCHW f32; compute is NHWC
    with bf16 activations between stages (f32 stats / accumulation / BN math)."""
    x = jnp.transpose(x_nchw, (0, 2, 3, 1)).astype(MXU_DTYPE)   # NCHW -> NHWC
    for i, p in enumerate(params_list):
        x = basic_block(x, p, stride if i == 0 else 1)
    return jnp.transpose(x, (0, 3, 1, 2)).astype(jnp.float32)   # NHWC -> NCHW


# ----------------------------------------------------------------------- params

def init_block_params(key, cin, cout):
    ks = jax.random.split(key, 7)

    def he(k, shape):  # kaiming-normal-ish, HWIO layout
        fan = shape[0] * shape[1] * shape[3]
        return jax.random.normal(k, shape, jnp.float32) * np.float32(np.sqrt(2.0 / fan))

    p = dict(
        bn1_g=1.0 + 0.1 * jax.random.normal(ks[0], (cin,), jnp.float32),
        bn1_b=0.1 * jax.random.normal(ks[1], (cin,), jnp.float32),
        conv1_w=he(ks[2], (3, 3, cin, cout)),
        bn2_g=1.0 + 0.1 * jax.random.normal(ks[3], (cout,), jnp.float32),
        bn2_b=0.1 * jax.random.normal(ks[4], (cout,), jnp.float32),
        conv2_w=he(ks[5], (3, 3, cout, cout)),
    )
    if cin != cout:
        p["conv_sc_w"] = he(ks[6], (1, 1, cin, cout))
    return p


# -------------------------------------------- pure-JAX reference (verification)

def _ref_bn_relu(x, g, b):
    mean = x.mean(axis=(0, 1, 2), keepdims=True)
    var = ((x - mean) ** 2).mean(axis=(0, 1, 2), keepdims=True)
    return jnp.maximum((x - mean) * jax.lax.rsqrt(var + 1e-5) * g + b, 0.0)


def _ref_conv(x, w, stride, padding):
    return jax.lax.conv_general_dilated(
        x, w, (stride, stride), [(padding, padding)] * 2,
        dimension_numbers=("NHWC", "HWIO", "NHWC"))


def _ref_block(x, p, stride):
    cin = x.shape[-1]
    cout = p["conv1_w"].shape[-1]
    a = _ref_bn_relu(x, p["bn1_g"], p["bn1_b"])
    out = _ref_conv(a, p["conv1_w"], stride, 1)
    out = _ref_bn_relu(out, p["bn2_g"], p["bn2_b"])
    res = x if cin == cout else _ref_conv(a, p["conv_sc_w"], stride, 0)
    return res + _ref_conv(out, p["conv2_w"], 1, 1)


def _ref_forward(x_nchw, params_list, stride):
    x = jnp.transpose(x_nchw, (0, 2, 3, 1)).astype(jnp.float32)
    for i, p in enumerate(params_list):
        x = _ref_block(x, p, stride if i == 0 else 1)
    return jnp.transpose(x, (0, 3, 1, 2))


# --------------------------------------------------------------------------- main

if __name__ == "__main__":
    key = jax.random.PRNGKey(0)
    k_x, k_p0, k_p1 = jax.random.split(key, 3)

    # OrderedNetworkBlock(nb_layers=2, in_planes=4, out_planes=8, block=BasicBlock,
    #                     stride=2, dropRate=0.0)
    nb_layers, in_planes, out_planes, stride = 2, 4, 8, 2
    x = jax.random.normal(k_x, (2, in_planes, 16, 16), jnp.float32)   # NCHW input

    params = [init_block_params(k_p0, in_planes, out_planes),
              init_block_params(k_p1, out_planes, out_planes)]

    _single_buffer_ok()      # probe Buffered(1) support once, outside jit tracing
    _vmem_limit_bytes()

    fwd = jax.jit(lambda xx: ordered_network_block(xx, params, stride))
    out = jax.block_until_ready(fwd(x))

    ref = jax.block_until_ready(_ref_forward(x, params, stride))
    assert out.shape == (2, out_planes, 8, 8), out.shape
    # bf16 activations / MXU operands (f32 accumulate, f32 BN math) vs. strict f32
    # reference: tolerance sized for bf16 rounding through 4 convs + 4 batch-norms.
    max_err = float(np.max(np.abs(np.asarray(out) - np.asarray(ref))))
    assert np.allclose(np.asarray(out), np.asarray(ref), rtol=5e-2, atol=1e-1), max_err

    print("KERNEL_OK")
</pallas_src>

<mosaic_0001>
module attributes {stable_mosaic.version = 11 : i64} {
  func.func @_copy_kernel(%arg0: i32, %arg1: memref<8x128xf32, #tpu.memory_space<vmem>>, %arg2: memref<8x128xf32, #tpu.memory_space<vmem>>) attributes {dimension_semantics = [#tpu.dimension_semantics<arbitrary>], iteration_bounds = array<i64: 1>, scalar_prefetch = 0 : i64, scratch_operands = 0 : i64, tpu.core_type = #tpu.core_type<tc>, window_params = [{pipeline_mode = #tpu.pipeline_mode<synchronous>, transform_indices = @transform_0, window_bounds = array<i64: 8, 128>}, {pipeline_mode = #tpu.pipeline_mode<synchronous>, transform_indices = @transform_1, window_bounds = array<i64: 8, 128>}]} {
    %c0 = arith.constant 0 : index
    %c0_0 = arith.constant 0 : index
    %0 = vector.load %arg1[%c0, %c0_0] : memref<8x128xf32, #tpu.memory_space<vmem>>, vector<8x128xf32>
    %c0_1 = arith.constant 0 : index
    %c0_2 = arith.constant 0 : index
    %1 = vector.load %arg2[%c0_1, %c0_2] : memref<8x128xf32, #tpu.memory_space<vmem>>, vector<8x128xf32>
    tpu.vector_store %arg2[%c0_1, %c0_2], %0 {strides = array<i32>} : memref<8x128xf32, #tpu.memory_space<vmem>>, vector<8x128xf32>,
    return
  }
  func.func @transform_0(%arg0: i32) -> (i32, i32) {
    %c0_i32 = arith.constant 0 : i32
    %c0_i32_0 = arith.constant 0 : i32
    %c0_i32_1 = arith.constant 0 : i32
    return %c0_i32, %c0_i32_0 : i32, i32
  }
  func.func @transform_1(%arg0: i32) -> (i32, i32) {
    %c0_i32 = arith.constant 0 : i32
    %c0_i32_0 = arith.constant 0 : i32
    %c0_i32_1 = arith.constant 0 : i32
    return %c0_i32, %c0_i32_0 : i32, i32
  }
}

module attributes {stable_mosaic.version = 11 : i64} {
  func.func @_stats_kernel(%arg0: i32, %arg1: memref<512x128xbf16, #tpu.memory_space<vmem>>, %arg2: memref<2x8x128xf32, #tpu.memory_space<vmem>>) attributes {dimension_semantics = [#tpu.dimension_semantics<arbitrary>], iteration_bounds = array<i64: 1>, scalar_prefetch = 0 : i64, scratch_operands = 0 : i64, tpu.core_type = #tpu.core_type<tc>, window_params = [{transform_indices = @transform_0, window_bounds = array<i64: 512, 128>}, {pipeline_mode = #tpu.pipeline_mode<synchronous>, transform_indices = @transform_1, window_bounds = array<i64: 2, 8, 128>}]} {
    %c0_i32 = arith.constant 0 : i32
    %0 = arith.cmpi eq, %arg0, %c0_i32 : i32
    %1 = arith.extui %0 : i1 to i32
    %c0_i32_0 = arith.constant 0 : i32
    %2 = arith.cmpi ne, %1, %c0_i32_0 : i32
    scf.if %2 {
      %cst_14 = arith.constant 0.000000e+00 : f32
      %26 = vector.broadcast %cst_14 : f32 to vector<2x8x128xf32>
      %c0_15 = arith.constant 0 : index
      %c0_16 = arith.constant 0 : index
      %c0_17 = arith.constant 0 : index
      %27 = vector.load %arg2[%c0_15, %c0_16, %c0_17] : memref<2x8x128xf32, #tpu.memory_space<vmem>>, vector<2x8x128xf32>
      tpu.vector_store %arg2[%c0_15, %c0_16, %c0_17], %26 {strides = array<i32>} : memref<2x8x128xf32, #tpu.memory_space<vmem>>, vector<2x8x128xf32>,
    } else {
    }
    %c0 = arith.constant 0 : index
    %c0_1 = arith.constant 0 : index
    %3 = vector.load %arg1[%c0, %c0_1] : memref<512x128xbf16, #tpu.memory_space<vmem>>, vector<512x128xbf16>
    %4 = arith.extf %3 : vector<512x128xbf16> to vector<512x128xf32>
    %c0_2 = arith.constant 0 : index
    %c0_3 = arith.constant 0 : index
    %c0_4 = arith.constant 0 : index
    %5 = vector.load %arg2[%c0_2, %c0_3, %c0_4] : memref<2x8x128xf32, #tpu.memory_space<vmem>>, vector<1x8x128xf32>
    %6 = vector.shape_cast %5 : vector<1x8x128xf32> to vector<8x128xf32>
    %cst = arith.constant dense<0.000000e+00> : vector<128xf32>
    %7 = vector.multi_reduction <add>, %4, %cst [0] : vector<512x128xf32> to vector<128xf32>
    %8 = vector.shape_cast %7 : vector<128xf32> to vector<1x128xf32>
    %9 = vector.shape_cast %8 : vector<1x128xf32> to vector<1x128xf32>
    %10 = vector.broadcast %9 : vector<1x128xf32> to vector<8x128xf32>
    %11 = arith.addf %6, %10 : vector<8x128xf32>
    %c0_5 = arith.constant 0 : index
    %c0_6 = arith.constant 0 : index
    %c0_7 = arith.constant 0 : index
    %12 = vector.load %arg2[%c0_5, %c0_6, %c0_7] : memref<2x8x128xf32, #tpu.memory_space<vmem>>, vector<1x8x128xf32>
    %13 = vector.shape_cast %12 : vector<1x8x128xf32> to vector<8x128xf32>
    %14 = vector.shape_cast %11 : vector<8x128xf32> to vector<1x8x128xf32>
    tpu.vector_store %arg2[%c0_5, %c0_6, %c0_7], %14 {strides = array<i32>} : memref<2x8x128xf32, #tpu.memory_space<vmem>>, vector<1x8x128xf32>,
    %c1 = arith.constant 1 : index
    %c0_8 = arith.constant 0 : index
    %c0_9 = arith.constant 0 : index
    %15 = vector.load %arg2[%c1, %c0_8, %c0_9] : memref<2x8x128xf32, #tpu.memory_space<vmem>>, vector<1x8x128xf32>
    %16 = vector.shape_cast %15 : vector<1x8x128xf32> to vector<8x128xf32>
    %17 = arith.mulf %4, %4 : vector<512x128xf32>
    %cst_10 = arith.constant dense<0.000000e+00> : vector<128xf32>
    %18 = vector.multi_reduction <add>, %17, %cst_10 [0] : vector<512x128xf32> to vector<128xf32>
    %19 = vector.shape_cast %18 : vector<128xf32> to vector<1x128xf32>
    %20 = vector.shape_cast %19 : vector<1x128xf32> to vector<1x128xf32>
    %21 = vector.broadcast %20 : vector<1x128xf32> to vector<8x128xf32>
    %22 = arith.addf %16, %21 : vector<8x128xf32>
    %c1_11 = arith.constant 1 : index
    %c0_12 = arith.constant 0 : index
    %c0_13 = arith.constant 0 : index
    %23 = vector.load %arg2[%c1_11, %c0_12, %c0_13] : memref<2x8x128xf32, #tpu.memory_space<vmem>>, vector<1x8x128xf32>
    %24 = vector.shape_cast %23 : vector<1x8x128xf32> to vector<8x128xf32>
    %25 = vector.shape_cast %22 : vector<8x128xf32> to vector<1x8x128xf32>
    tpu.vector_store %arg2[%c1_11, %c0_12, %c0_13], %25 {strides = array<i32>} : memref<2x8x128xf32, #tpu.memory_space<vmem>>, vector<1x8x128xf32>,
    return
  }
  func.func @transform_0(%arg0: i32) -> (i32, i32) {
    %c0_i32 = arith.constant 0 : i32
    %c0_i32_0 = arith.constant 0 : i32
    return %arg0, %c0_i32 : i32, i32
  }
  func.func @transform_1(%arg0: i32) -> (i32, i32, i32) {
    %c0_i32 = arith.constant 0 : i32
    %c0_i32_0 = arith.constant 0 : i32
    %c0_i32_1 = arith.constant 0 : i32
    %c0_i32_2 = arith.constant 0 : i32
    return %c0_i32, %c0_i32_0, %c0_i32_1 : i32, i32, i32
  }
}

module attributes {stable_mosaic.version = 11 : i64} {
  func.func @_conv_kernel(%arg0: i32, %arg1: i32, %arg2: memref<1x64x128xbf16, #tpu.memory_space<vmem>>, %arg3: memref<9x128x128xbf16, #tpu.memory_space<vmem>>, %arg4: memref<9x1x128xf32, #tpu.memory_space<vmem>>, %arg5: memref<9x1x128xf32, #tpu.memory_space<vmem>>, %arg6: memref<1x64x1xf32, #tpu.memory_space<vmem>>, %arg7: memref<64x128xbf16, #tpu.memory_space<vmem>>, %arg8: memref<64x128xf32, #tpu.memory_space<vmem>>) attributes {dimension_semantics = [#tpu.dimension_semantics<parallel>, #tpu.dimension_semantics<arbitrary>], iteration_bounds = array<i64: 2, 9>, scalar_prefetch = 0 : i64, scratch_operands = 1 : i64, tpu.core_type = #tpu.core_type<tc>, window_params = [{transform_indices = @transform_0, window_bounds = array<i64: 1, 64, 128>}, {pipeline_mode = #tpu.pipeline_mode<synchronous>, transform_indices = @transform_1, window_bounds = array<i64: 9, 128, 128>}, {pipeline_mode = #tpu.pipeline_mode<synchronous>, transform_indices = @transform_2, window_bounds = array<i64: 9, 1, 128>}, {pipeline_mode = #tpu.pipeline_mode<synchronous>, transform_indices = @transform_3, window_bounds = array<i64: 9, 1, 128>}, {transform_indices = @transform_4, window_bounds = array<i64: 1, 64, 1>}, {transform_indices = @transform_5, window_bounds = array<i64: 64, 128>}]} {
    %c0_i32 = arith.constant 0 : i32
    %0 = arith.cmpi eq, %arg1, %c0_i32 : i32
    %1 = arith.extui %0 : i1 to i32
    %c0_i32_0 = arith.constant 0 : i32
    %2 = arith.cmpi ne, %1, %c0_i32_0 : i32
    scf.if %2 {
      %cst_18 = arith.constant 0.000000e+00 : f32
      %33 = vector.broadcast %cst_18 : f32 to vector<64x128xf32>
      %c0_19 = arith.constant 0 : index
      %c0_20 = arith.constant 0 : index
      %34 = vector.load %arg8[%c0_19, %c0_20] : memref<64x128xf32, #tpu.memory_space<vmem>>, vector<64x128xf32>
      tpu.vector_store %arg8[%c0_19, %c0_20], %33 {strides = array<i32>} : memref<64x128xf32, #tpu.memory_space<vmem>>, vector<64x128xf32>,
    } else {
    }
    %c0 = arith.constant 0 : index
    %c0_1 = arith.constant 0 : index
    %c0_2 = arith.constant 0 : index
    %3 = vector.load %arg2[%c0, %c0_1, %c0_2] : memref<1x64x128xbf16, #tpu.memory_space<vmem>>, vector<1x64x128xbf16>
    %4 = vector.shape_cast %3 : vector<1x64x128xbf16> to vector<64x128xbf16>
    %5 = arith.index_cast %arg1 : i32 to index
    %c0_3 = arith.constant 0 : index
    %c0_4 = arith.constant 0 : index
    %6 = vector.load %arg4[%5, %c0_3, %c0_4] : memref<9x1x128xf32, #tpu.memory_space<vmem>>, vector<1x1x128xf32>
    %7 = vector.shape_cast %6 : vector<1x1x128xf32> to vector<1x128xf32>
    %8 = arith.extf %4 : vector<64x128xbf16> to vector<64x128xf32>
    %9 = vector.broadcast %7 : vector<1x128xf32> to vector<64x128xf32>
    %10 = arith.mulf %8, %9 : vector<64x128xf32>
    %11 = arith.index_cast %arg1 : i32 to index
    %c0_5 = arith.constant 0 : index
    %c0_6 = arith.constant 0 : index
    %12 = vector.load %arg5[%11, %c0_5, %c0_6] : memref<9x1x128xf32, #tpu.memory_space<vmem>>, vector<1x1x128xf32>
    %13 = vector.shape_cast %12 : vector<1x1x128xf32> to vector<1x128xf32>
    %14 = vector.broadcast %13 : vector<1x128xf32> to vector<64x128xf32>
    %15 = arith.addf %10, %14 : vector<64x128xf32>
    %cst = arith.constant 0.000000e+00 : f32
    %16 = vector.broadcast %cst : f32 to vector<64x128xf32>
    %17 = arith.maximumf %15, %16 : vector<64x128xf32>
    %c0_7 = arith.constant 0 : index
    %c0_8 = arith.constant 0 : index
    %c0_9 = arith.constant 0 : index
    %18 = vector.load %arg6[%c0_7, %c0_8, %c0_9] : memref<1x64x1xf32, #tpu.memory_space<vmem>>, vector<1x64x1xf32>
    %19 = vector.shape_cast %18 : vector<1x64x1xf32> to vector<64x1xf32>
    %20 = vector.broadcast %19 : vector<64x1xf32> to vector<64x128xf32>
    %21 = arith.mulf %17, %20 : vector<64x128xf32>
    %c0_10 = arith.constant 0 : index
    %c0_11 = arith.constant 0 : index
    %22 = vector.load %arg8[%c0_10, %c0_11] : memref<64x128xf32, #tpu.memory_space<vmem>>, vector<64x128xf32>
    %23 = arith.truncf %21 : vector<64x128xf32> to vector<64x128xbf16>
    %24 = arith.index_cast %arg1 : i32 to index
    %c0_12 = arith.constant 0 : index
    %c0_13 = arith.constant 0 : index
    %25 = vector.load %arg3[%24, %c0_12, %c0_13] : memref<9x128x128xbf16, #tpu.memory_space<vmem>>, vector<1x128x128xbf16>
    %26 = vector.shape_cast %25 : vector<1x128x128xbf16> to vector<128x128xbf16>
    %cst_14 = arith.constant dense<0.000000e+00> : vector<64x128xf32>
    %27 = tpu.matmul %23, %26, %cst_14 {dimension_numbers = #tpu.dot_dimension_numbers<[1], [0], [0], [1], [0, 0, 1, 1], [], []>} : vector<64x128xbf16>, vector<128x128xbf16>, vector<64x128xf32> -> vector<64x128xf32>
    %28 = arith.addf %22, %27 : vector<64x128xf32>
    %c0_15 = arith.constant 0 : index
    %c0_16 = arith.constant 0 : index
    %29 = vector.load %arg8[%c0_15, %c0_16] : memref<64x128xf32, #tpu.memory_space<vmem>>, vector<64x128xf32>
    tpu.vector_store %arg8[%c0_15, %c0_16], %28 {strides = array<i32>} : memref<64x128xf32, #tpu.memory_space<vmem>>, vector<64x128xf32>,
    %c8_i32 = arith.constant 8 : i32
    %30 = arith.cmpi eq, %arg1, %c8_i32 : i32
    %31 = arith.extui %30 : i1 to i32
    %c0_i32_17 = arith.constant 0 : i32
    %32 = arith.cmpi ne, %31, %c0_i32_17 : i32
    scf.if %32 {
      %c0_18 = arith.constant 0 : index
      %c0_19 = arith.constant 0 : index
      %33 = vector.load %arg8[%c0_18, %c0_19] : memref<64x128xf32, #tpu.memory_space<vmem>>, vector<64x128xf32>
      %34 = arith.truncf %33 : vector<64x128xf32> to vector<64x128xbf16>
      %c0_20 = arith.constant 0 : index
      %c0_21 = arith.constant 0 : index
      %35 = vector.load %arg7[%c0_20, %c0_21] : memref<64x128xbf16, #tpu.memory_space<vmem>>, vector<64x128xbf16>
      tpu.vector_store %arg7[%c0_20, %c0_21], %34 {strides = array<i32>} : memref<64x128xbf16, #tpu.memory_space<vmem>>, vector<64x128xbf16>,
    } else {
    }
    return
  }
  func.func @transform_0(%arg0: i32, %arg1: i32) -> (i32, i32, i32) {
    %c0_i32 = arith.constant 0 : i32
    %c0_i32_0 = arith.constant 0 : i32
    return %arg1, %arg0, %c0_i32 : i32, i32, i32
  }
  func.func @transform_1(%arg0: i32, %arg1: i32) -> (i32, i32, i32) {
    %c0_i32 = arith.constant 0 : i32
    %c0_i32_0 = arith.constant 0 : i32
    %c0_i32_1 = arith.constant 0 : i32
    %c0_i32_2 = arith.constant 0 : i32
    return %c0_i32, %c0_i32_0, %c0_i32_1 : i32, i32, i32
  }
  func.func @transform_2(%arg0: i32, %arg1: i32) -> (i32, i32, i32) {
    %c0_i32 = arith.constant 0 : i32
    %c0_i32_0 = arith.constant 0 : i32
    %c0_i32_1 = arith.constant 0 : i32
    %c0_i32_2 = arith.constant 0 : i32
    return %c0_i32, %c0_i32_0, %c0_i32_1 : i32, i32, i32
  }
  func.func @transform_3(%arg0: i32, %arg1: i32) -> (i32, i32, i32) {
    %c0_i32 = arith.constant 0 : i32
    %c0_i32_0 = arith.constant 0 : i32
    %c0_i32_1 = arith.constant 0 : i32
    %c0_i32_2 = arith.constant 0 : i32
    return %c0_i32, %c0_i32_0, %c0_i32_1 : i32, i32, i32
  }
  func.func @transform_4(%arg0: i32, %arg1: i32) -> (i32, i32, i32) {
    %c0_i32 = arith.constant 0 : i32
    %c0_i32_0 = arith.constant 0 : i32
    return %arg1, %arg0, %c0_i32 : i32, i32, i32
  }
  func.func @transform_5(%arg0: i32, %arg1: i32) -> (i32, i32) {
    %c0_i32 = arith.constant 0 : i32
    %c0_i32_0 = arith.constant 0 : i32
    return %arg0, %c0_i32 : i32, i32
  }
}

module attributes {stable_mosaic.version = 11 : i64} {
  func.func @_stats_kernel(%arg0: i32, %arg1: memref<128x128xbf16, #tpu.memory_space<vmem>>, %arg2: memref<2x8x128xf32, #tpu.memory_space<vmem>>) attributes {dimension_semantics = [#tpu.dimension_semantics<arbitrary>], iteration_bounds = array<i64: 1>, scalar_prefetch = 0 : i64, scratch_operands = 0 : i64, tpu.core_type = #tpu.core_type<tc>, window_params = [{transform_indices = @transform_0, window_bounds = array<i64: 128, 128>}, {pipeline_mode = #tpu.pipeline_mode<synchronous>, transform_indices = @transform_1, window_bounds = array<i64: 2, 8, 128>}]} {
    %c0_i32 = arith.constant 0 : i32
    %0 = arith.cmpi eq, %arg0, %c0_i32 : i32
    %1 = arith.extui %0 : i1 to i32
    %c0_i32_0 = arith.constant 0 : i32
    %2 = arith.cmpi ne, %1, %c0_i32_0 : i32
    scf.if %2 {
      %cst_14 = arith.constant 0.000000e+00 : f32
      %26 = vector.broadcast %cst_14 : f32 to vector<2x8x128xf32>
      %c0_15 = arith.constant 0 : index
      %c0_16 = arith.constant 0 : index
      %c0_17 = arith.constant 0 : index
      %27 = vector.load %arg2[%c0_15, %c0_16, %c0_17] : memref<2x8x128xf32, #tpu.memory_space<vmem>>, vector<2x8x128xf32>
      tpu.vector_store %arg2[%c0_15, %c0_16, %c0_17], %26 {strides = array<i32>} : memref<2x8x128xf32, #tpu.memory_space<vmem>>, vector<2x8x128xf32>,
    } else {
    }
    %c0 = arith.constant 0 : index
    %c0_1 = arith.constant 0 : index
    %3 = vector.load %arg1[%c0, %c0_1] : memref<128x128xbf16, #tpu.memory_space<vmem>>, vector<128x128xbf16>
    %4 = arith.extf %3 : vector<128x128xbf16> to vector<128x128xf32>
    %c0_2 = arith.constant 0 : index
    %c0_3 = arith.constant 0 : index
    %c0_4 = arith.constant 0 : index
    %5 = vector.load %arg2[%c0_2, %c0_3, %c0_4] : memref<2x8x128xf32, #tpu.memory_space<vmem>>, vector<1x8x128xf32>
    %6 = vector.shape_cast %5 : vector<1x8x128xf32> to vector<8x128xf32>
    %cst = arith.constant dense<0.000000e+00> : vector<128xf32>
    %7 = vector.multi_reduction <add>, %4, %cst [0] : vector<128x128xf32> to vector<128xf32>
    %8 = vector.shape_cast %7 : vector<128xf32> to vector<1x128xf32>
    %9 = vector.shape_cast %8 : vector<1x128xf32> to vector<1x128xf32>
    %10 = vector.broadcast %9 : vector<1x128xf32> to vector<8x128xf32>
    %11 = arith.addf %6, %10 : vector<8x128xf32>
    %c0_5 = arith.constant 0 : index
    %c0_6 = arith.constant 0 : index
    %c0_7 = arith.constant 0 : index
    %12 = vector.load %arg2[%c0_5, %c0_6, %c0_7] : memref<2x8x128xf32, #tpu.memory_space<vmem>>, vector<1x8x128xf32>
    %13 = vector.shape_cast %12 : vector<1x8x128xf32> to vector<8x128xf32>
    %14 = vector.shape_cast %11 : vector<8x128xf32> to vector<1x8x128xf32>
    tpu.vector_store %arg2[%c0_5, %c0_6, %c0_7], %14 {strides = array<i32>} : memref<2x8x128xf32, #tpu.memory_space<vmem>>, vector<1x8x128xf32>,
    %c1 = arith.constant 1 : index
    %c0_8 = arith.constant 0 : index
    %c0_9 = arith.constant 0 : index
    %15 = vector.load %arg2[%c1, %c0_8, %c0_9] : memref<2x8x128xf32, #tpu.memory_space<vmem>>, vector<1x8x128xf32>
    %16 = vector.shape_cast %15 : vector<1x8x128xf32> to vector<8x128xf32>
    %17 = arith.mulf %4, %4 : vector<128x128xf32>
    %cst_10 = arith.constant dense<0.000000e+00> : vector<128xf32>
    %18 = vector.multi_reduction <add>, %17, %cst_10 [0] : vector<128x128xf32> to vector<128xf32>
    %19 = vector.shape_cast %18 : vector<128xf32> to vector<1x128xf32>
    %20 = vector.shape_cast %19 : vector<1x128xf32> to vector<1x128xf32>
    %21 = vector.broadcast %20 : vector<1x128xf32> to vector<8x128xf32>
    %22 = arith.addf %16, %21 : vector<8x128xf32>
    %c1_11 = arith.constant 1 : index
    %c0_12 = arith.constant 0 : index
    %c0_13 = arith.constant 0 : index
    %23 = vector.load %arg2[%c1_11, %c0_12, %c0_13] : memref<2x8x128xf32, #tpu.memory_space<vmem>>, vector<1x8x128xf32>
    %24 = vector.shape_cast %23 : vector<1x8x128xf32> to vector<8x128xf32>
    %25 = vector.shape_cast %22 : vector<8x128xf32> to vector<1x8x128xf32>
    tpu.vector_store %arg2[%c1_11, %c0_12, %c0_13], %25 {strides = array<i32>} : memref<2x8x128xf32, #tpu.memory_space<vmem>>, vector<1x8x128xf32>,
    return
  }
  func.func @transform_0(%arg0: i32) -> (i32, i32) {
    %c0_i32 = arith.constant 0 : i32
    %c0_i32_0 = arith.constant 0 : i32
    return %arg0, %c0_i32 : i32, i32
  }
  func.func @transform_1(%arg0: i32) -> (i32, i32, i32) {
    %c0_i32 = arith.constant 0 : i32
    %c0_i32_0 = arith.constant 0 : i32
    %c0_i32_1 = arith.constant 0 : i32
    %c0_i32_2 = arith.constant 0 : i32
    return %c0_i32, %c0_i32_0, %c0_i32_1 : i32, i32, i32
  }
}

module attributes {stable_mosaic.version = 11 : i64} {
  func.func @_conv_kernel(%arg0: i32, %arg1: i32, %arg2: memref<1x64x128xbf16, #tpu.memory_space<vmem>>, %arg3: memref<10x128x128xbf16, #tpu.memory_space<vmem>>, %arg4: memref<10x1x128xf32, #tpu.memory_space<vmem>>, %arg5: memref<10x1x128xf32, #tpu.memory_space<vmem>>, %arg6: memref<1x64x1xf32, #tpu.memory_space<vmem>>, %arg7: memref<64x128xbf16, #tpu.memory_space<vmem>>, %arg8: memref<64x128xf32, #tpu.memory_space<vmem>>) attributes {dimension_semantics = [#tpu.dimension_semantics<parallel>, #tpu.dimension_semantics<arbitrary>], iteration_bounds = array<i64: 2, 10>, scalar_prefetch = 0 : i64, scratch_operands = 1 : i64, tpu.core_type = #tpu.core_type<tc>, window_params = [{transform_indices = @transform_0, window_bounds = array<i64: 1, 64, 128>}, {pipeline_mode = #tpu.pipeline_mode<synchronous>, transform_indices = @transform_1, window_bounds = array<i64: 10, 128, 128>}, {pipeline_mode = #tpu.pipeline_mode<synchronous>, transform_indices = @transform_2, window_bounds = array<i64: 10, 1, 128>}, {pipeline_mode = #tpu.pipeline_mode<synchronous>, transform_indices = @transform_3, window_bounds = array<i64: 10, 1, 128>}, {transform_indices = @transform_4, window_bounds = array<i64: 1, 64, 1>}, {transform_indices = @transform_5, window_bounds = array<i64: 64, 128>}]} {
    %c0_i32 = arith.constant 0 : i32
    %0 = arith.cmpi eq, %arg1, %c0_i32 : i32
    %1 = arith.extui %0 : i1 to i32
    %c0_i32_0 = arith.constant 0 : i32
    %2 = arith.cmpi ne, %1, %c0_i32_0 : i32
    scf.if %2 {
      %cst_18 = arith.constant 0.000000e+00 : f32
      %33 = vector.broadcast %cst_18 : f32 to vector<64x128xf32>
      %c0_19 = arith.constant 0 : index
      %c0_20 = arith.constant 0 : index
      %34 = vector.load %arg8[%c0_19, %c0_20] : memref<64x128xf32, #tpu.memory_space<vmem>>, vector<64x128xf32>
      tpu.vector_store %arg8[%c0_19, %c0_20], %33 {strides = array<i32>} : memref<64x128xf32, #tpu.memory_space<vmem>>, vector<64x128xf32>,
    } else {
    }
    %c0 = arith.constant 0 : index
    %c0_1 = arith.constant 0 : index
    %c0_2 = arith.constant 0 : index
    %3 = vector.load %arg2[%c0, %c0_1, %c0_2] : memref<1x64x128xbf16, #tpu.memory_space<vmem>>, vector<1x64x128xbf16>
    %4 = vector.shape_cast %3 : vector<1x64x128xbf16> to vector<64x128xbf16>
    %5 = arith.index_cast %arg1 : i32 to index
    %c0_3 = arith.constant 0 : index
    %c0_4 = arith.constant 0 : index
    %6 = vector.load %arg4[%5, %c0_3, %c0_4] : memref<10x1x128xf32, #tpu.memory_space<vmem>>, vector<1x1x128xf32>
    %7 = vector.shape_cast %6 : vector<1x1x128xf32> to vector<1x128xf32>
    %8 = arith.extf %4 : vector<64x128xbf16> to vector<64x128xf32>
    %9 = vector.broadcast %7 : vector<1x128xf32> to vector<64x128xf32>
    %10 = arith.mulf %8, %9 : vector<64x128xf32>
    %11 = arith.index_cast %arg1 : i32 to index
    %c0_5 = arith.constant 0 : index
    %c0_6 = arith.constant 0 : index
    %12 = vector.load %arg5[%11, %c0_5, %c0_6] : memref<10x1x128xf32, #tpu.memory_space<vmem>>, vector<1x1x128xf32>
    %13 = vector.shape_cast %12 : vector<1x1x128xf32> to vector<1x128xf32>
    %14 = vector.broadcast %13 : vector<1x128xf32> to vector<64x128xf32>
    %15 = arith.addf %10, %14 : vector<64x128xf32>
    %cst = arith.constant 0.000000e+00 : f32
    %16 = vector.broadcast %cst : f32 to vector<64x128xf32>
    %17 = arith.maximumf %15, %16 : vector<64x128xf32>
    %c0_7 = arith.constant 0 : index
    %c0_8 = arith.constant 0 : index
    %c0_9 = arith.constant 0 : index
    %18 = vector.load %arg6[%c0_7, %c0_8, %c0_9] : memref<1x64x1xf32, #tpu.memory_space<vmem>>, vector<1x64x1xf32>
    %19 = vector.shape_cast %18 : vector<1x64x1xf32> to vector<64x1xf32>
    %20 = vector.broadcast %19 : vector<64x1xf32> to vector<64x128xf32>
    %21 = arith.mulf %17, %20 : vector<64x128xf32>
    %c0_10 = arith.constant 0 : index
    %c0_11 = arith.constant 0 : index
    %22 = vector.load %arg8[%c0_10, %c0_11] : memref<64x128xf32, #tpu.memory_space<vmem>>, vector<64x128xf32>
    %23 = arith.truncf %21 : vector<64x128xf32> to vector<64x128xbf16>
    %24 = arith.index_cast %arg1 : i32 to index
    %c0_12 = arith.constant 0 : index
    %c0_13 = arith.constant 0 : index
    %25 = vector.load %arg3[%24, %c0_12, %c0_13] : memref<10x128x128xbf16, #tpu.memory_space<vmem>>, vector<1x128x128xbf16>
    %26 = vector.shape_cast %25 : vector<1x128x128xbf16> to vector<128x128xbf16>
    %cst_14 = arith.constant dense<0.000000e+00> : vector<64x128xf32>
    %27 = tpu.matmul %23, %26, %cst_14 {dimension_numbers = #tpu.dot_dimension_numbers<[1], [0], [0], [1], [0, 0, 1, 1], [], []>} : vector<64x128xbf16>, vector<128x128xbf16>, vector<64x128xf32> -> vector<64x128xf32>
    %28 = arith.addf %22, %27 : vector<64x128xf32>
    %c0_15 = arith.constant 0 : index
    %c0_16 = arith.constant 0 : index
    %29 = vector.load %arg8[%c0_15, %c0_16] : memref<64x128xf32, #tpu.memory_space<vmem>>, vector<64x128xf32>
    tpu.vector_store %arg8[%c0_15, %c0_16], %28 {strides = array<i32>} : memref<64x128xf32, #tpu.memory_space<vmem>>, vector<64x128xf32>,
    %c9_i32 = arith.constant 9 : i32
    %30 = arith.cmpi eq, %arg1, %c9_i32 : i32
    %31 = arith.extui %30 : i1 to i32
    %c0_i32_17 = arith.constant 0 : i32
    %32 = arith.cmpi ne, %31, %c0_i32_17 : i32
    scf.if %32 {
      %c0_18 = arith.constant 0 : index
      %c0_19 = arith.constant 0 : index
      %33 = vector.load %arg8[%c0_18, %c0_19] : memref<64x128xf32, #tpu.memory_space<vmem>>, vector<64x128xf32>
      %34 = arith.truncf %33 : vector<64x128xf32> to vector<64x128xbf16>
      %c0_20 = arith.constant 0 : index
      %c0_21 = arith.constant 0 : index
      %35 = vector.load %arg7[%c0_20, %c0_21] : memref<64x128xbf16, #tpu.memory_space<vmem>>, vector<64x128xbf16>
      tpu.vector_store %arg7[%c0_20, %c0_21], %34 {strides = array<i32>} : memref<64x128xbf16, #tpu.memory_space<vmem>>, vector<64x128xbf16>,
    } else {
    }
    return
  }
  func.func @transform_0(%arg0: i32, %arg1: i32) -> (i32, i32, i32) {
    %c0_i32 = arith.constant 0 : i32
    %c0_i32_0 = arith.constant 0 : i32
    return %arg1, %arg0, %c0_i32 : i32, i32, i32
  }
  func.func @transform_1(%arg0: i32, %arg1: i32) -> (i32, i32, i32) {
    %c0_i32 = arith.constant 0 : i32
    %c0_i32_0 = arith.constant 0 : i32
    %c0_i32_1 = arith.constant 0 : i32
    %c0_i32_2 = arith.constant 0 : i32
    return %c0_i32, %c0_i32_0, %c0_i32_1 : i32, i32, i32
  }
  func.func @transform_2(%arg0: i32, %arg1: i32) -> (i32, i32, i32) {
    %c0_i32 = arith.constant 0 : i32
    %c0_i32_0 = arith.constant 0 : i32
    %c0_i32_1 = arith.constant 0 : i32
    %c0_i32_2 = arith.constant 0 : i32
    return %c0_i32, %c0_i32_0, %c0_i32_1 : i32, i32, i32
  }
  func.func @transform_3(%arg0: i32, %arg1: i32) -> (i32, i32, i32) {
    %c0_i32 = arith.constant 0 : i32
    %c0_i32_0 = arith.constant 0 : i32
    %c0_i32_1 = arith.constant 0 : i32
    %c0_i32_2 = arith.constant 0 : i32
    return %c0_i32, %c0_i32_0, %c0_i32_1 : i32, i32, i32
  }
  func.func @transform_4(%arg0: i32, %arg1: i32) -> (i32, i32, i32) {
    %c0_i32 = arith.constant 0 : i32
    %c0_i32_0 = arith.constant 0 : i32
    return %arg1, %arg0, %c0_i32 : i32, i32, i32
  }
  func.func @transform_5(%arg0: i32, %arg1: i32) -> (i32, i32) {
    %c0_i32 = arith.constant 0 : i32
    %c0_i32_0 = arith.constant 0 : i32
    return %arg0, %c0_i32 : i32, i32
  }
}

module attributes {stable_mosaic.version = 11 : i64} {
  func.func @_conv_residual_kernel(%arg0: i32, %arg1: i32, %arg2: memref<1x64x128xbf16, #tpu.memory_space<vmem>>, %arg3: memref<9x128x128xbf16, #tpu.memory_space<vmem>>, %arg4: memref<9x1x128xf32, #tpu.memory_space<vmem>>, %arg5: memref<9x1x128xf32, #tpu.memory_space<vmem>>, %arg6: memref<1x64x1xf32, #tpu.memory_space<vmem>>, %arg7: memref<64x128xbf16, #tpu.memory_space<vmem>>, %arg8: memref<64x128xbf16, #tpu.memory_space<vmem>>, %arg9: memref<64x128xf32, #tpu.memory_space<vmem>>) attributes {dimension_semantics = [#tpu.dimension_semantics<parallel>, #tpu.dimension_semantics<arbitrary>], iteration_bounds = array<i64: 2, 9>, scalar_prefetch = 0 : i64, scratch_operands = 1 : i64, tpu.core_type = #tpu.core_type<tc>, window_params = [{transform_indices = @transform_0, window_bounds = array<i64: 1, 64, 128>}, {pipeline_mode = #tpu.pipeline_mode<synchronous>, transform_indices = @transform_1, window_bounds = array<i64: 9, 128, 128>}, {pipeline_mode = #tpu.pipeline_mode<synchronous>, transform_indices = @transform_2, window_bounds = array<i64: 9, 1, 128>}, {pipeline_mode = #tpu.pipeline_mode<synchronous>, transform_indices = @transform_3, window_bounds = array<i64: 9, 1, 128>}, {transform_indices = @transform_4, window_bounds = array<i64: 1, 64, 1>}, {transform_indices = @transform_5, window_bounds = array<i64: 64, 128>}, {transform_indices = @transform_6, window_bounds = array<i64: 64, 128>}]} {
    %c0_i32 = arith.constant 0 : i32
    %0 = arith.cmpi eq, %arg1, %c0_i32 : i32
    %1 = arith.extui %0 : i1 to i32
    %c0_i32_0 = arith.constant 0 : i32
    %2 = arith.cmpi ne, %1, %c0_i32_0 : i32
    scf.if %2 {
      %cst_18 = arith.constant 0.000000e+00 : f32
      %33 = vector.broadcast %cst_18 : f32 to vector<64x128xf32>
      %c0_19 = arith.constant 0 : index
      %c0_20 = arith.constant 0 : index
      %34 = vector.load %arg9[%c0_19, %c0_20] : memref<64x128xf32, #tpu.memory_space<vmem>>, vector<64x128xf32>
      tpu.vector_store %arg9[%c0_19, %c0_20], %33 {strides = array<i32>} : memref<64x128xf32, #tpu.memory_space<vmem>>, vector<64x128xf32>,
    } else {
    }
    %c0 = arith.constant 0 : index
    %c0_1 = arith.constant 0 : index
    %c0_2 = arith.constant 0 : index
    %3 = vector.load %arg2[%c0, %c0_1, %c0_2] : memref<1x64x128xbf16, #tpu.memory_space<vmem>>, vector<1x64x128xbf16>
    %4 = vector.shape_cast %3 : vector<1x64x128xbf16> to vector<64x128xbf16>
    %5 = arith.index_cast %arg1 : i32 to index
    %c0_3 = arith.constant 0 : index
    %c0_4 = arith.constant 0 : index
    %6 = vector.load %arg4[%5, %c0_3, %c0_4] : memref<9x1x128xf32, #tpu.memory_space<vmem>>, vector<1x1x128xf32>
    %7 = vector.shape_cast %6 : vector<1x1x128xf32> to vector<1x128xf32>
    %8 = arith.extf %4 : vector<64x128xbf16> to vector<64x128xf32>
    %9 = vector.broadcast %7 : vector<1x128xf32> to vector<64x128xf32>
    %10 = arith.mulf %8, %9 : vector<64x128xf32>
    %11 = arith.index_cast %arg1 : i32 to index
    %c0_5 = arith.constant 0 : index
    %c0_6 = arith.constant 0 : index
    %12 = vector.load %arg5[%11, %c0_5, %c0_6] : memref<9x1x128xf32, #tpu.memory_space<vmem>>, vector<1x1x128xf32>
    %13 = vector.shape_cast %12 : vector<1x1x128xf32> to vector<1x128xf32>
    %14 = vector.broadcast %13 : vector<1x128xf32> to vector<64x128xf32>
    %15 = arith.addf %10, %14 : vector<64x128xf32>
    %cst = arith.constant 0.000000e+00 : f32
    %16 = vector.broadcast %cst : f32 to vector<64x128xf32>
    %17 = arith.maximumf %15, %16 : vector<64x128xf32>
    %c0_7 = arith.constant 0 : index
    %c0_8 = arith.constant 0 : index
    %c0_9 = arith.constant 0 : index
    %18 = vector.load %arg6[%c0_7, %c0_8, %c0_9] : memref<1x64x1xf32, #tpu.memory_space<vmem>>, vector<1x64x1xf32>
    %19 = vector.shape_cast %18 : vector<1x64x1xf32> to vector<64x1xf32>
    %20 = vector.broadcast %19 : vector<64x1xf32> to vector<64x128xf32>
    %21 = arith.mulf %17, %20 : vector<64x128xf32>
    %c0_10 = arith.constant 0 : index
    %c0_11 = arith.constant 0 : index
    %22 = vector.load %arg9[%c0_10, %c0_11] : memref<64x128xf32, #tpu.memory_space<vmem>>, vector<64x128xf32>
    %23 = arith.truncf %21 : vector<64x128xf32> to vector<64x128xbf16>
    %24 = arith.index_cast %arg1 : i32 to index
    %c0_12 = arith.constant 0 : index
    %c0_13 = arith.constant 0 : index
    %25 = vector.load %arg3[%24, %c0_12, %c0_13] : memref<9x128x128xbf16, #tpu.memory_space<vmem>>, vector<1x128x128xbf16>
    %26 = vector.shape_cast %25 : vector<1x128x128xbf16> to vector<128x128xbf16>
    %cst_14 = arith.constant dense<0.000000e+00> : vector<64x128xf32>
    %27 = tpu.matmul %23, %26, %cst_14 {dimension_numbers = #tpu.dot_dimension_numbers<[1], [0], [0], [1], [0, 0, 1, 1], [], []>} : vector<64x128xbf16>, vector<128x128xbf16>, vector<64x128xf32> -> vector<64x128xf32>
    %28 = arith.addf %22, %27 : vector<64x128xf32>
    %c0_15 = arith.constant 0 : index
    %c0_16 = arith.constant 0 : index
    %29 = vector.load %arg9[%c0_15, %c0_16] : memref<64x128xf32, #tpu.memory_space<vmem>>, vector<64x128xf32>
    tpu.vector_store %arg9[%c0_15, %c0_16], %28 {strides = array<i32>} : memref<64x128xf32, #tpu.memory_space<vmem>>, vector<64x128xf32>,
    %c8_i32 = arith.constant 8 : i32
    %30 = arith.cmpi eq, %arg1, %c8_i32 : i32
    %31 = arith.extui %30 : i1 to i32
    %c0_i32_17 = arith.constant 0 : i32
    %32 = arith.cmpi ne, %31, %c0_i32_17 : i32
    scf.if %32 {
      %c0_18 = arith.constant 0 : index
      %c0_19 = arith.constant 0 : index
      %33 = vector.load %arg9[%c0_18, %c0_19] : memref<64x128xf32, #tpu.memory_space<vmem>>, vector<64x128xf32>
      %c0_20 = arith.constant 0 : index
      %c0_21 = arith.constant 0 : index
      %34 = vector.load %arg7[%c0_20, %c0_21] : memref<64x128xbf16, #tpu.memory_space<vmem>>, vector<64x128xbf16>
      %35 = arith.extf %34 : vector<64x128xbf16> to vector<64x128xf32>
      %36 = arith.addf %33, %35 : vector<64x128xf32>
      %37 = arith.truncf %36 : vector<64x128xf32> to vector<64x128xbf16>
      %c0_22 = arith.constant 0 : index
      %c0_23 = arith.constant 0 : index
      %38 = vector.load %arg8[%c0_22, %c0_23] : memref<64x128xbf16, #tpu.memory_space<vmem>>, vector<64x128xbf16>
      tpu.vector_store %arg8[%c0_22, %c0_23], %37 {strides = array<i32>} : memref<64x128xbf16, #tpu.memory_space<vmem>>, vector<64x128xbf16>,
    } else {
    }
    return
  }
  func.func @transform_0(%arg0: i32, %arg1: i32) -> (i32, i32, i32) {
    %c0_i32 = arith.constant 0 : i32
    %c0_i32_0 = arith.constant 0 : i32
    return %arg1, %arg0, %c0_i32 : i32, i32, i32
  }
  func.func @transform_1(%arg0: i32, %arg1: i32) -> (i32, i32, i32) {
    %c0_i32 = arith.constant 0 : i32
    %c0_i32_0 = arith.constant 0 : i32
    %c0_i32_1 = arith.constant 0 : i32
    %c0_i32_2 = arith.constant 0 : i32
    return %c0_i32, %c0_i32_0, %c0_i32_1 : i32, i32, i32
  }
  func.func @transform_2(%arg0: i32, %arg1: i32) -> (i32, i32, i32) {
    %c0_i32 = arith.constant 0 : i32
    %c0_i32_0 = arith.constant 0 : i32
    %c0_i32_1 = arith.constant 0 : i32
    %c0_i32_2 = arith.constant 0 : i32
    return %c0_i32, %c0_i32_0, %c0_i32_1 : i32, i32, i32
  }
  func.func @transform_3(%arg0: i32, %arg1: i32) -> (i32, i32, i32) {
    %c0_i32 = arith.constant 0 : i32
    %c0_i32_0 = arith.constant 0 : i32
    %c0_i32_1 = arith.constant 0 : i32
    %c0_i32_2 = arith.constant 0 : i32
    return %c0_i32, %c0_i32_0, %c0_i32_1 : i32, i32, i32
  }
  func.func @transform_4(%arg0: i32, %arg1: i32) -> (i32, i32, i32) {
    %c0_i32 = arith.constant 0 : i32
    %c0_i32_0 = arith.constant 0 : i32
    return %arg1, %arg0, %c0_i32 : i32, i32, i32
  }
  func.func @transform_5(%arg0: i32, %arg1: i32) -> (i32, i32) {
    %c0_i32 = arith.constant 0 : i32
    %c0_i32_0 = arith.constant 0 : i32
    return %arg0, %c0_i32 : i32, i32
  }
  func.func @transform_6(%arg0: i32, %arg1: i32) -> (i32, i32) {
    %c0_i32 = arith.constant 0 : i32
    %c0_i32_0 = arith.constant 0 : i32
    return %arg0, %c0_i32 : i32, i32
  }
}

</mosaic_0001>

<bundles_post_ra>
// kernel: tpu_custom_call.1
= control target key start
LH: loop header
LB: loop body
LE: loop exit
PB: predicated region body
PF: predicated region fallthrough
CT: control target
= control target key end

     0   :  { %6 = vsyncpa [#allocation3], 0  ;;  %s114_s0 = inlined_call_operand.hbm [shape: f32[8,128], index: 0, kind: input, shape index: {}]   ;;  %s115_s1 = inlined_call_operand.hbm [shape: f32[8,128], index: 1, kind: output, shape index: {}]  }
   0x1   :  { %7 = vsyncpa [#allocation4], 0  ;;  %s13_s8 = sshll.u32 %s114_s0, 4  ;;  %s96_s9 = smov [#allocation2]   ;;  %s14_s8 = int_to_ptr.hbm [resolvable:$true] %s13_s8 }
   0x2   :  { %s15_s10 = sshll.u32 %s96_s9, 4  ;;  %s16_s10 = int_to_ptr.vmem [resolvable:$true] %s15_s10 }
   0x3   :  { %18 = dma.hbm_to_vmem [thread:$0]  %s14_s8, 128, %s16_s10, [#allocation3]  }
   0x4   :  { %92 = dma.done.wait [#allocation3], 128  }
   0x5   :  { %93 = vsyncadd [#allocation3], 4294967168  ;;  %s97_s11 = smov [#allocation5]   ;;  %s32_s15 = sshll.u32 %s115_s1, 4  ;;  %v23_v0 = vld [vmem:[#allocation2] sm:$0xff]  ;;  %s33_s15 = int_to_ptr.hbm [resolvable:$true] %s32_s15 }
   0x6   :  { %s30_s12 = sshll.u32 %s97_s11, 4  ;;  %24 = vst [vmem:[#allocation5] sm:$0xff] %v23_v0  ;;  %s31_s12 = int_to_ptr.vmem [resolvable:$true] %s30_s12 }
   0x7   :  { %35 = dma.vmem_to_hbm [thread:$0]  %s31_s12, 128, %s33_s15, [#allocation4]  }
   0x8   :  { %94 = dma.done.wait [#allocation4], 128  }
   0x9   :  { %95 = vsyncadd [#allocation4], 4294967168 }
   0xa   :  { %40 = vsyncpa [#allocation3], 1 }
   0xb   :  { %41 = vsyncpa [#allocation4], 1 }

// kernel: _lambda_.8
= control target key start
LH: loop header
LB: loop body
LE: loop exit
PB: predicated region body
PF: predicated region fallthrough
CT: control target
= control target key end

     0   :  { %s629_s0 = inlined_call_operand.vmem [shape: bf16[512,128], index: 0, kind: input, shape index: {}]   ;;  %s630_s1 = inlined_call_operand.vmem [shape: f32[2,8,128], index: 1, kind: output, shape index: {}]  }
   0x1   :  { %v358_v0 = vld [vmem:[%s629_s0] sm:$0xff]   ;;  %v485_v1 = vld [vmem:[%s629_s0 + $0x8] sm:$0xff]   ;;  %v486_v5 = vld [vmem:[%s629_s0 + $0x10] sm:$0xff]  }
   0x2   :  { %v359_v2 = vunpack.c.l.bf16 %v358_v0  ;;  %v360_v3 = vunpack.c.h.bf16 %v358_v0  ;;  %v363_v4 = vunpack.c.l.bf16 %v485_v1  ;;  %v364_v7 = vunpack.c.h.bf16 %v485_v1  ;;  %v487_v13 = vld [vmem:[%s629_s0 + $0x18] sm:$0xff]   ;;  %v488_v22 = vld [vmem:[%s629_s0 + $0x20] sm:$0xff]   ;;  %v489_v31 = vld [vmem:[%s629_s0 + $0x28] sm:$0xff]  }
   0x3   :  { %v367_v11 = vunpack.c.l.bf16 %v486_v5  ;;  %v368_v15 = vunpack.c.h.bf16 %v486_v5  ;;  %v371_v19 = vunpack.c.l.bf16 %v487_v13  ;;  %v372_v24 = vunpack.c.h.bf16 %v487_v13  ;;  %v490_v40 = vld [vmem:[%s629_s0 + $0x30] sm:$0xff]   ;;  %v491_v49 = vld [vmem:[%s629_s0 + $0x38] sm:$0xff]   ;;  %v492_v58 = vld [vmem:[%s629_s0 + $0x40] sm:$0xff]  }
   0x4   :  { %v143_v6 = vadd.f32 %v360_v3, %v359_v2  ;;  %v216_v8 = vmul.f32 %v359_v2, %v359_v2  ;;  %v217_v9 = vmul.f32 %v360_v3, %v360_v3  ;;  %v218_v12 = vmul.f32 %v363_v4, %v363_v4  ;;  %v493_v3 = vld [vmem:[%s629_s0 + $0x48] sm:$0xff]  }
   0x5   :  { %v219_v16 = vmul.f32 %v364_v7, %v364_v7  ;;  %v220_v20 = vmul.f32 %v367_v11, %v367_v11  ;;  %v221_v25 = vmul.f32 %v368_v15, %v368_v15  ;;  %v375_v28 = vunpack.c.l.bf16 %v488_v22 }
   0x6   :  { %v144_v10 = vadd.f32 %v363_v4, %v143_v6  ;;  %v280_v17 = vadd.f32 %v217_v9, %v216_v8  ;;  %v222_v29 = vmul.f32 %v371_v19, %v371_v19  ;;  %v376_v33 = vunpack.c.h.bf16 %v488_v22 }
   0x7   :  { %v223_v34 = vmul.f32 %v372_v24, %v372_v24  ;;  %v379_v37 = vunpack.c.l.bf16 %v489_v31  ;;  %v224_v38 = vmul.f32 %v375_v28, %v375_v28  ;;  %v380_v42 = vunpack.c.h.bf16 %v489_v31 }
   0x8   :  { %v145_v14 = vadd.f32 %v364_v7, %v144_v10  ;;  %v281_v21 = vadd.f32 %v280_v17, %v218_v12  ;;  %v225_v43 = vmul.f32 %v376_v33, %v376_v33  ;;  %v383_v46 = vunpack.c.l.bf16 %v490_v40  ;;  %v494_v12 = vld [vmem:[%s629_s0 + $0x50] sm:$0xff]  }
   0x9   :  { %v226_v47 = vmul.f32 %v379_v37, %v379_v37  ;;  %v384_v51 = vunpack.c.h.bf16 %v490_v40  ;;  %v227_v52 = vmul.f32 %v380_v42, %v380_v42  ;;  %v387_v55 = vunpack.c.l.bf16 %v491_v49 }
   0xa   :  { %v146_v18 = vadd.f32 %v367_v11, %v145_v14  ;;  %v282_v26 = vadd.f32 %v281_v21, %v219_v16  ;;  %v228_v56 = vmul.f32 %v383_v46, %v383_v46  ;;  %v388_v60 = vunpack.c.h.bf16 %v491_v49  ;;  %v495_v21 = vld [vmem:[%s629_s0 + $0x58] sm:$0xff]  }
   0xb   :  { %v229_v61 = vmul.f32 %v384_v51, %v384_v51  ;;  %v391_v0 = vunpack.c.l.bf16 %v492_v58  ;;  %v230_v1 = vmul.f32 %v387_v55, %v387_v55  ;;  %v392_v5 = vunpack.c.h.bf16 %v492_v58 }
   0xc   :  { %v147_v23 = vadd.f32 %v368_v15, %v146_v18  ;;  %v283_v30 = vadd.f32 %v282_v26, %v220_v20  ;;  %v231_v6 = vmul.f32 %v388_v60, %v388_v60  ;;  %v395_v9 = vunpack.c.l.bf16 %v493_v3 }
   0xd   :  { %v232_v10 = vmul.f32 %v391_v0, %v391_v0  ;;  %v396_v14 = vunpack.c.h.bf16 %v493_v3  ;;  %v233_v15 = vmul.f32 %v392_v5, %v392_v5  ;;  %v399_v18 = vunpack.c.l.bf16 %v494_v12 }
   0xe   :  { %v148_v27 = vadd.f32 %v371_v19, %v147_v23  ;;  %v284_v35 = vadd.f32 %v283_v30, %v221_v25  ;;  %v234_v19 = vmul.f32 %v395_v9, %v395_v9  ;;  %v400_v23 = vunpack.c.h.bf16 %v494_v12  ;;  %v496_v30 = vld [vmem:[%s629_s0 + $0x60] sm:$0xff]  }
  0x10   :  { %v149_v32 = vadd.f32 %v372_v24, %v148_v27  ;;  %v285_v39 = vadd.f32 %v284_v35, %v222_v29  ;;  %v235_v24 = vmul.f32 %v396_v14, %v396_v14  ;;  %v403_v27 = vunpack.c.l.bf16 %v495_v21 }
  0x12   :  { %v150_v36 = vadd.f32 %v375_v28, %v149_v32  ;;  %v286_v44 = vadd.f32 %v285_v39, %v223_v34  ;;  %v236_v28 = vmul.f32 %v399_v18, %v399_v18  ;;  %v404_v32 = vunpack.c.h.bf16 %v495_v21  ;;  %v497_v39 = vld [vmem:[%s629_s0 + $0x68] sm:$0xff]  }
  0x14   :  { %v151_v41 = vadd.f32 %v376_v33, %v150_v36  ;;  %v287_v48 = vadd.f32 %v286_v44, %v224_v38  ;;  %v237_v33 = vmul.f32 %v400_v23, %v400_v23  ;;  %v407_v36 = vunpack.c.l.bf16 %v496_v30 }
  0x16   :  { %v152_v45 = vadd.f32 %v379_v37, %v151_v41  ;;  %v288_v53 = vadd.f32 %v287_v48, %v225_v43  ;;  %v238_v37 = vmul.f32 %v403_v27, %v403_v27  ;;  %v408_v41 = vunpack.c.h.bf16 %v496_v30  ;;  %v498_v48 = vld [vmem:[%s629_s0 + $0x70] sm:$0xff]  }
  0x18   :  { %v153_v50 = vadd.f32 %v380_v42, %v152_v45  ;;  %v289_v57 = vadd.f32 %v288_v53, %v226_v47  ;;  %v239_v42 = vmul.f32 %v404_v32, %v404_v32  ;;  %v411_v45 = vunpack.c.l.bf16 %v497_v39 }
  0x1a   :  { %v154_v54 = vadd.f32 %v383_v46, %v153_v50  ;;  %v290_v62 = vadd.f32 %v289_v57, %v227_v52  ;;  %v240_v46 = vmul.f32 %v407_v36, %v407_v36  ;;  %v412_v50 = vunpack.c.h.bf16 %v497_v39  ;;  %v499_v57 = vld [vmem:[%s629_s0 + $0x78] sm:$0xff]  }
  0x1c   :  { %v155_v59 = vadd.f32 %v384_v51, %v154_v54  ;;  %v291_v2 = vadd.f32 %v290_v62, %v228_v56  ;;  %v241_v51 = vmul.f32 %v408_v41, %v408_v41  ;;  %v415_v54 = vunpack.c.l.bf16 %v498_v48 }
  0x1e   :  { %v156_v63 = vadd.f32 %v387_v55, %v155_v59  ;;  %v292_v7 = vadd.f32 %v291_v2, %v229_v61  ;;  %v242_v55 = vmul.f32 %v411_v45, %v411_v45  ;;  %v416_v59 = vunpack.c.h.bf16 %v498_v48  ;;  %v500_v2 = vld [vmem:[%s629_s0 + $0x80] sm:$0xff]  }
  0x20   :  { %v157_v4 = vadd.f32 %v388_v60, %v156_v63  ;;  %v293_v11 = vadd.f32 %v292_v7, %v230_v1  ;;  %v243_v60 = vmul.f32 %v412_v50, %v412_v50  ;;  %v419_v63 = vunpack.c.l.bf16 %v499_v57 }
  0x22   :  { %v158_v8 = vadd.f32 %v391_v0, %v157_v4  ;;  %v294_v16 = vadd.f32 %v293_v11, %v231_v6  ;;  %v244_v0 = vmul.f32 %v415_v54, %v415_v54  ;;  %v420_v4 = vunpack.c.h.bf16 %v499_v57  ;;  %v501_v11 = vld [vmem:[%s629_s0 + $0x88] sm:$0xff]  }
  0x24   :  { %v159_v13 = vadd.f32 %v392_v5, %v158_v8  ;;  %v295_v20 = vadd.f32 %v294_v16, %v232_v10  ;;  %v245_v5 = vmul.f32 %v416_v59, %v416_v59  ;;  %v423_v8 = vunpack.c.l.bf16 %v500_v2 }
  0x26   :  { %v160_v17 = vadd.f32 %v395_v9, %v159_v13  ;;  %v296_v25 = vadd.f32 %v295_v20, %v233_v15  ;;  %v246_v9 = vmul.f32 %v419_v63, %v419_v63  ;;  %v424_v13 = vunpack.c.h.bf16 %v500_v2  ;;  %v502_v20 = vld [vmem:[%s629_s0 + $0x90] sm:$0xff]  }
  0x28   :  { %v161_v22 = vadd.f32 %v396_v14, %v160_v17  ;;  %v297_v29 = vadd.f32 %v296_v25, %v234_v19  ;;  %v247_v14 = vmul.f32 %v420_v4, %v420_v4  ;;  %v427_v17 = vunpack.c.l.bf16 %v501_v11 }
  0x2a   :  { %v162_v26 = vadd.f32 %v399_v18, %v161_v22  ;;  %v298_v34 = vadd.f32 %v297_v29, %v235_v24  ;;  %v248_v18 = vmul.f32 %v423_v8, %v423_v8  ;;  %v428_v22 = vunpack.c.h.bf16 %v501_v11  ;;  %v503_v29 = vld [vmem:[%s629_s0 + $0x98] sm:$0xff]  }
  0x2c   :  { %v163_v31 = vadd.f32 %v400_v23, %v162_v26  ;;  %v299_v38 = vadd.f32 %v298_v34, %v236_v28  ;;  %v249_v23 = vmul.f32 %v424_v13, %v424_v13  ;;  %v431_v26 = vunpack.c.l.bf16 %v502_v20 }
  0x2e   :  { %v164_v35 = vadd.f32 %v403_v27, %v163_v31  ;;  %v300_v43 = vadd.f32 %v299_v38, %v237_v33  ;;  %v250_v27 = vmul.f32 %v427_v17, %v427_v17  ;;  %v432_v31 = vunpack.c.h.bf16 %v502_v20  ;;  %v504_v38 = vld [vmem:[%s629_s0 + $0xa0] sm:$0xff]  }
  0x30   :  { %v165_v40 = vadd.f32 %v404_v32, %v164_v35  ;;  %v301_v47 = vadd.f32 %v300_v43, %v238_v37  ;;  %v251_v32 = vmul.f32 %v428_v22, %v428_v22  ;;  %v435_v35 = vunpack.c.l.bf16 %v503_v29 }
  0x32   :  { %v166_v44 = vadd.f32 %v407_v36, %v165_v40  ;;  %v302_v52 = vadd.f32 %v301_v47, %v239_v42  ;;  %v252_v36 = vmul.f32 %v431_v26, %v431_v26  ;;  %v436_v40 = vunpack.c.h.bf16 %v503_v29  ;;  %v505_v47 = vld [vmem:[%s629_s0 + $0xa8] sm:$0xff]  }
  0x34   :  { %v167_v49 = vadd.f32 %v408_v41, %v166_v44  ;;  %v303_v56 = vadd.f32 %v302_v52, %v240_v46  ;;  %v253_v41 = vmul.f32 %v432_v31, %v432_v31  ;;  %v439_v44 = vunpack.c.l.bf16 %v504_v38 }
  0x36   :  { %v168_v53 = vadd.f32 %v411_v45, %v167_v49  ;;  %v304_v61 = vadd.f32 %v303_v56, %v241_v51  ;;  %v254_v45 = vmul.f32 %v435_v35, %v435_v35  ;;  %v440_v49 = vunpack.c.h.bf16 %v504_v38  ;;  %v506_v56 = vld [vmem:[%s629_s0 + $0xb0] sm:$0xff]  }
  0x38   :  { %v169_v58 = vadd.f32 %v412_v50, %v168_v53  ;;  %v305_v1 = vadd.f32 %v304_v61, %v242_v55  ;;  %v255_v50 = vmul.f32 %v436_v40, %v436_v40  ;;  %v443_v53 = vunpack.c.l.bf16 %v505_v47 }
  0x3a   :  { %v170_v62 = vadd.f32 %v415_v54, %v169_v58  ;;  %v306_v6 = vadd.f32 %v305_v1, %v243_v60  ;;  %v256_v54 = vmul.f32 %v439_v44, %v439_v44  ;;  %v444_v58 = vunpack.c.h.bf16 %v505_v47  ;;  %v507_v1 = vld [vmem:[%s629_s0 + $0xb8] sm:$0xff]  }
  0x3c   :  { %v171_v3 = vadd.f32 %v416_v59, %v170_v62  ;;  %v307_v10 = vadd.f32 %v306_v6, %v244_v0  ;;  %v257_v59 = vmul.f32 %v440_v49, %v440_v49  ;;  %v447_v62 = vunpack.c.l.bf16 %v506_v56 }
  0x3e   :  { %v172_v7 = vadd.f32 %v419_v63, %v171_v3  ;;  %v308_v15 = vadd.f32 %v307_v10, %v245_v5  ;;  %v258_v63 = vmul.f32 %v443_v53, %v443_v53  ;;  %v448_v3 = vunpack.c.h.bf16 %v506_v56  ;;  %v508_v10 = vld [vmem:[%s629_s0 + $0xc0] sm:$0xff]  }
  0x40   :  { %v173_v12 = vadd.f32 %v420_v4, %v172_v7  ;;  %v309_v19 = vadd.f32 %v308_v15, %v246_v9  ;;  %v259_v4 = vmul.f32 %v444_v58, %v444_v58  ;;  %v451_v7 = vunpack.c.l.bf16 %v507_v1 }
  0x42   :  { %v174_v16 = vadd.f32 %v423_v8, %v173_v12  ;;  %v310_v24 = vadd.f32 %v309_v19, %v247_v14  ;;  %v260_v8 = vmul.f32 %v447_v62, %v447_v62  ;;  %v452_v12 = vunpack.c.h.bf16 %v507_v1  ;;  %v509_v19 = vld [vmem:[%s629_s0 + $0xc8] sm:$0xff]  }
  0x44   :  { %v175_v21 = vadd.f32 %v424_v13, %v174_v16  ;;  %v311_v28 = vadd.f32 %v310_v24, %v248_v18  ;;  %v261_v13 = vmul.f32 %v448_v3, %v448_v3  ;;  %v455_v16 = vunpack.c.l.bf16 %v508_v10 }
  0x46   :  { %v176_v25 = vadd.f32 %v427_v17, %v175_v21  ;;  %v312_v33 = vadd.f32 %v311_v28, %v249_v23  ;;  %v262_v17 = vmul.f32 %v451_v7, %v451_v7  ;;  %v456_v21 = vunpack.c.h.bf16 %v508_v10  ;;  %v510_v28 = vld [vmem:[%s629_s0 + $0xd0] sm:$0xff]  }
  0x48   :  { %v177_v30 = vadd.f32 %v428_v22, %v176_v25  ;;  %v313_v37 = vadd.f32 %v312_v33, %v250_v27  ;;  %v263_v22 = vmul.f32 %v452_v12, %v452_v12  ;;  %v459_v25 = vunpack.c.l.bf16 %v509_v19 }
  0x4a   :  { %v178_v34 = vadd.f32 %v431_v26, %v177_v30  ;;  %v314_v42 = vadd.f32 %v313_v37, %v251_v32  ;;  %v264_v26 = vmul.f32 %v455_v16, %v455_v16  ;;  %v460_v30 = vunpack.c.h.bf16 %v509_v19  ;;  %v511_v37 = vld [vmem:[%s629_s0 + $0xd8] sm:$0xff]  }
  0x4c   :  { %v179_v39 = vadd.f32 %v432_v31, %v178_v34  ;;  %v315_v46 = vadd.f32 %v314_v42, %v252_v36  ;;  %v265_v31 = vmul.f32 %v456_v21, %v456_v21  ;;  %v463_v34 = vunpack.c.l.bf16 %v510_v28 }
  0x4e   :  { %v180_v43 = vadd.f32 %v435_v35, %v179_v39  ;;  %v316_v51 = vadd.f32 %v315_v46, %v253_v41  ;;  %v266_v35 = vmul.f32 %v459_v25, %v459_v25  ;;  %v464_v39 = vunpack.c.h.bf16 %v510_v28  ;;  %v512_v46 = vld [vmem:[%s629_s0 + $0xe0] sm:$0xff]  }
  0x50   :  { %v181_v48 = vadd.f32 %v436_v40, %v180_v43  ;;  %v317_v55 = vadd.f32 %v316_v51, %v254_v45  ;;  %v267_v40 = vmul.f32 %v460_v30, %v460_v30  ;;  %v467_v43 = vunpack.c.l.bf16 %v511_v37 }
  0x52   :  { %v182_v52 = vadd.f32 %v439_v44, %v181_v48  ;;  %v318_v60 = vadd.f32 %v317_v55, %v255_v50  ;;  %v268_v44 = vmul.f32 %v463_v34, %v463_v34  ;;  %v468_v48 = vunpack.c.h.bf16 %v511_v37  ;;  %v513_v55 = vld [vmem:[%s629_s0 + $0xe8] sm:$0xff]  }
  0x54   :  { %v183_v57 = vadd.f32 %v440_v49, %v182_v52  ;;  %v319_v0 = vadd.f32 %v318_v60, %v256_v54  ;;  %v269_v49 = vmul.f32 %v464_v39, %v464_v39  ;;  %v471_v52 = vunpack.c.l.bf16 %v512_v46 }
  0x56   :  { %v184_v61 = vadd.f32 %v443_v53, %v183_v57  ;;  %v320_v5 = vadd.f32 %v319_v0, %v257_v59  ;;  %v270_v53 = vmul.f32 %v467_v43, %v467_v43  ;;  %v472_v57 = vunpack.c.h.bf16 %v512_v46  ;;  %v514_v0 = vld [vmem:[%s629_s0 + $0xf0] sm:$0xff]  }
  0x58   :  { %v185_v2 = vadd.f32 %v444_v58, %v184_v61  ;;  %v321_v9 = vadd.f32 %v320_v5, %v258_v63  ;;  %v271_v58 = vmul.f32 %v468_v48, %v468_v48  ;;  %v475_v61 = vunpack.c.l.bf16 %v513_v55 }
  0x5a   :  { %v186_v6 = vadd.f32 %v447_v62, %v185_v2  ;;  %v322_v14 = vadd.f32 %v321_v9, %v259_v4  ;;  %v272_v62 = vmul.f32 %v471_v52, %v471_v52  ;;  %v476_v2 = vunpack.c.h.bf16 %v513_v55  ;;  %v515_v9 = vld [vmem:[%s629_s0 + $0xf8] sm:$0xff]  }
  0x5b   :  { %v484_v19 = vunpack.c.h.bf16 %v515_v9 }
  0x5c   :  { %v187_v11 = vadd.f32 %v448_v3, %v186_v6  ;;  %v323_v18 = vadd.f32 %v322_v14, %v260_v8  ;;  %v273_v3 = vmul.f32 %v472_v57, %v472_v57  ;;  %v479_v6 = vunpack.c.l.bf16 %v514_v0 }
  0x5e   :  { %v188_v15 = vadd.f32 %v451_v7, %v187_v11  ;;  %v324_v23 = vadd.f32 %v323_v18, %v261_v13  ;;  %v274_v7 = vmul.f32 %v475_v61, %v475_v61  ;;  %v480_v11 = vunpack.c.h.bf16 %v514_v0 }
  0x60   :  { %v189_v20 = vadd.f32 %v452_v12, %v188_v15  ;;  %v325_v27 = vadd.f32 %v324_v23, %v262_v17  ;;  %v275_v12 = vmul.f32 %v476_v2, %v476_v2  ;;  %v483_v15 = vunpack.c.l.bf16 %v515_v9 }
  0x62   :  { %v190_v24 = vadd.f32 %v455_v16, %v189_v20  ;;  %v326_v32 = vadd.f32 %v325_v27, %v263_v22  ;;  %v276_v16 = vmul.f32 %v479_v6, %v479_v6  ;;  %v277_v20 = vmul.f32 %v480_v11, %v480_v11 }
  0x63   :  { %v278_v23 = vmul.f32 %v483_v15, %v483_v15 }
  0x64   :  { %v191_v29 = vadd.f32 %v456_v21, %v190_v24  ;;  %v327_v36 = vadd.f32 %v326_v32, %v264_v26  ;;  %v279_v26 = vmul.f32 %v484_v19, %v484_v19 }
  0x66   :  { %v192_v33 = vadd.f32 %v459_v25, %v191_v29  ;;  %v328_v41 = vadd.f32 %v327_v36, %v265_v31 }
  0x68   :  { %v193_v38 = vadd.f32 %v460_v30, %v192_v33  ;;  %v329_v45 = vadd.f32 %v328_v41, %v266_v35 }
  0x6a   :  { %v194_v42 = vadd.f32 %v463_v34, %v193_v38  ;;  %v330_v50 = vadd.f32 %v329_v45, %v267_v40 }
  0x6c   :  { %v195_v47 = vadd.f32 %v464_v39, %v194_v42  ;;  %v331_v54 = vadd.f32 %v330_v50, %v268_v44 }
  0x6e   :  { %v196_v51 = vadd.f32 %v467_v43, %v195_v47  ;;  %v332_v59 = vadd.f32 %v331_v54, %v269_v49 }
  0x70   :  { %v197_v56 = vadd.f32 %v468_v48, %v196_v51  ;;  %v333_v63 = vadd.f32 %v332_v59, %v270_v53 }
  0x72   :  { %v198_v60 = vadd.f32 %v471_v52, %v197_v56  ;;  %v334_v4 = vadd.f32 %v333_v63, %v271_v58 }
  0x74   :  { %v199_v1 = vadd.f32 %v472_v57, %v198_v60  ;;  %v335_v8 = vadd.f32 %v334_v4, %v272_v62 }
  0x76   :  { %v200_v5 = vadd.f32 %v475_v61, %v199_v1  ;;  %v336_v13 = vadd.f32 %v335_v8, %v273_v3 }
  0x78   :  { %v201_v10 = vadd.f32 %v476_v2, %v200_v5  ;;  %v337_v17 = vadd.f32 %v336_v13, %v274_v7 }
  0x7a   :  { %v202_v14 = vadd.f32 %v479_v6, %v201_v10  ;;  %v338_v21 = vadd.f32 %v337_v17, %v275_v12 }
  0x7c   :  { %v203_v18 = vadd.f32 %v480_v11, %v202_v14  ;;  %v339_v24 = vadd.f32 %v338_v21, %v276_v16 }
  0x7e   :  { %v204_v22 = vadd.f32 %v483_v15, %v203_v18  ;;  %v340_v27 = vadd.f32 %v339_v24, %v277_v20 }
  0x80   :  { %v205_v25 = vadd.f32 %v484_v19, %v204_v22  ;;  %v341_v29 = vadd.f32 %v340_v27, %v278_v23 }
  0x82   :  { %v206_v28 = vrot.slane %v205_v25, 4  ;;  %v342_v31 = vadd.f32 %v341_v29, %v279_v26 }
  0x84   :  { %v207_v30 = vadd.f32 %v206_v28, %v205_v25  ;;  %v343_v33 = vrot.slane %v342_v31, 4 }
  0x86   :  { %v208_v32 = vrot.slane %v207_v30, 2  ;;  %v344_v35 = vadd.f32 %v343_v33, %v342_v31 }
  0x88   :  { %v209_v34 = vadd.f32 %v208_v32, %v207_v30  ;;  %v345_v37 = vrot.slane %v344_v35, 2 }
  0x8a   :  { %v210_v36 = vrot.slane %v209_v34, 1  ;;  %v346_v39 = vadd.f32 %v345_v37, %v344_v35 }
  0x8c   :  { %v211_v38 = vadd.f32 %v210_v36, %v209_v34  ;;  %v347_v40 = vrot.slane %v346_v39, 1 }
  0x8e   :  { %213 = vst [vmem:[%s630_s1] sm:$0xff] %v211_v38  ;;  %v348_v41 = vadd.f32 %v347_v40, %v346_v39 }
  0x90   :  { %356 = vst [vmem:[%s630_s1 + $0x8] sm:$0xff] %v348_v41 }

// kernel: _lambda_.9
= control target key start
LH: loop header
LB: loop body
LE: loop exit
PB: predicated region body
PF: predicated region fallthrough
CT: control target
= control target key end

     0   :  { %s901_s18 = smov 0   ;;  %s903_s19 = smov 0   ;;  %s1015_s0 = inlined_call_operand.vmem [shape: bf16[9,128,128], index: 0, kind: input, shape index: {}]   ;;  %s1016_s1 = inlined_call_operand.vmem [shape: bf16[9,128,128], index: 1, kind: input, shape index: {}]   ;;  %s1017_s2 = inlined_call_operand.vmem [shape: f32[9,1,128], index: 2, kind: input, shape index: {}]   ;;  %s1018_s3 = inlined_call_operand.vmem [shape: f32[9,1,128], index: 3, kind: input, shape index: {}]   ;;  %s1019_s4 = inlined_call_operand.vmem [shape: f32[9,128,1], index: 4, kind: input, shape index: {}]   ;;  %s1020_s5 = inlined_call_operand.vmem [shape: bf16[128,128], index: 5, kind: output, shape index: {}]  }
   0x1   :  { %s905_s20 = smov 0   ;;  %s907_s21 = smov 0  }
   0x2   :  { %s909_s22 = smov 0  }
   0x3 LB: > { %s24_s23 = sadd.s32 1, %s859_s20  ;;  %s27_s24 = sadd.s32 1, %s863_s21  ;;  %s867_s22 = sphi %s909_s22, %s15_s22   ;;  %s863_s21 = sphi %s907_s21, %s1024_s21   ;;  %s859_s20 = sphi %s905_s20, %s1023_s20   ;;  %s855_s19 = sphi %s903_s19, %s1022_s19   ;;  %s851_s18 = sphi %s901_s18, %s1021_s18  }
   0x4   : > { %p25_p0 = scmp.ge.s32.totalorder %s24_s23, 9  ;;  %p660_p1 = scmp.ge.s32.totalorder %s867_s22, 1 }
   0x5   : > { %p223_p2 = scmp.lt.s32.totalorder %s867_s22, 19 }
   0x6   : > { %s1026_s23 = smov (%p25_p0, %s24_s23), 0  ;;  %s1028_s24 = smov (!%p25_p0, %s27_s24), %s863_s21 }
   0x7   : > { %p224_p3 = pnand %p660_p1, %p223_p2  ;;  %p29_p4 = scmp.ge.s32.totalorder %s1028_s24, 2 }
   0x8   : > { %s661_s25 = sshll.u32 (!%p224_p3), %s855_s19, 3  ;;  %p265_p5 = scmp.lt.s32.totalorder (!%p224_p3), %s851_s18, 8 }
   0x9   : > { %s1030_s24 = smov (%p29_p4, %s1028_s24), 0  ;;  %227 = sbr.rel (%p224_p3) target bundleno = 313 (0x139), region = 40 }
   0xa   : > { %p267_p6 = scmp.lt.s32.totalorder (!%p224_p3), %s661_s25, 15  ;;  %p669_p7 = scmp.ne.s32.totalorder (!%p224_p3), %s851_s18, 0 }
   0xe   : > { %s266_s26 = scalar_select %p265_p5, %s851_s18, 8 }
   0xf   : > { %s1032_s25 = smov (!%p267_p6, %s661_s25), 15  ;;  %293 = sbr.rel (%p669_p7) target bundleno = 29 (0x1d), region = 44 }
  0x10   : > { %s662_s27 = sshll.u32 %s266_s26, 4  ;;  %s668_s29 = sshll.u32 %s1032_s25, 2 }
  0x11   : > { %s270_s28 = sadd.s32 %s662_s27, %s1032_s25  ;;  %s948_s15 = scalar_lea.vmem %s1020_s5, %s668_s29 }
  0x12   : > { %s663_s30 = sshll.u32 %s270_s28, 2  ;;  %s666_s6 = sshll.u32 %s270_s28, 3 }
  0x13   : > { %s938_s9 = scalar_lea.vmem %s1015_s0, %s663_s30  ;;  %s943_s12 = scalar_lea.vmem %s1019_s4, %s666_s6 }
  0x14   : > { %v869_v0 = vmov 0.0  }
  0x15   : > { %294 = vst [vmem:[#allocation2 + $0x30] sm:$0xff] %v869_v0 }
  0x16   : > { %295 = vst [vmem:[#allocation2] sm:$0xff] %v869_v0 }
  0x17   : > { %296 = vst [vmem:[#allocation2 + $0x18] sm:$0xff] %v869_v0 }
  0x18   : > { %297 = vst [vmem:[#allocation2 + $0x10] sm:$0xff] %v869_v0 }
  0x19   : > { %298 = vst [vmem:[#allocation2 + $0x8] sm:$0xff] %v869_v0 }
  0x1a   : > { %299 = vst [vmem:[#allocation2 + $0x20] sm:$0xff] %v869_v0 }
  0x1b   : > { %300 = vst [vmem:[#allocation2 + $0x28] sm:$0xff] %v869_v0 }
  0x1c   : > { %301 = vst [vmem:[#allocation2 + $0x38] sm:$0xff] %v869_v0 }
  0x1d PF: > { %v358_v1 = vld [vmem:[%s943_s12 + $0x30] sm:$0xff]  ;;  %v356_v2 = vld [vmem:[%s943_s12 + $0x20] sm:$0xff]  ;;  %s707_s16 = sshll.u32 %s851_s18, 6  ;;  %v870_v3 = vmov 0   ;;  %s310_s28 = scalar_lea.vmem %s1017_s2, %s851_s18  ;;  %v359_v7 = vld [vmem:[%s943_s12 + $0x38] sm:$0xff] }
  0x1e   : > { %825 = vset.pattern.permute.xlu1 %v870_v3  ;;  %824 = vset.pattern.permute.xlu0 %v870_v3  ;;  %s957_s25 = scalar_lea.vmem %s1016_s1, %s707_s16  ;;  %v352_v4 = vld [vmem:[%s943_s12] sm:$0xff]  ;;  %s331_s6 = scalar_lea.vmem %s1018_s3, %s851_s18  ;;  %v357_v8 = vld [vmem:[%s943_s12 + $0x28] sm:$0xff]  ;;  %v355_v12 = vld [vmem:[%s943_s12 + $0x18] sm:$0xff] }
  0x1f   : > { %392 = vperm.xlu1 %825, %v358_v1   ;;  %382 = vperm.xlu0 %824, %v356_v2   ;;  %v715_v5 = vld [vmem:[%s957_s25 + $0x38] sm:$0xff]  ;;  %v714_v6 = vld [vmem:[%s957_s25 + $0x30] sm:$0xff]  ;;  %v713_v9 = vld [vmem:[%s957_s25 + $0x28] sm:$0xff]  ;;  %p704_p8 = scmp.ne.s32.totalorder %s851_s18, 8 }
  0x20   : > { %826 = vset.pattern.permute.xlu2 %v870_v3  ;;  %487 = vmatpush.bf16.msra.mxu0 %v715_v5  ;;  %v353_v10 = vld [vmem:[%s943_s12 + $0x8] sm:$0xff]  ;;  %v712_v11 = vld [vmem:[%s957_s25 + $0x20] sm:$0xff]  ;;  %v354_v13 = vld [vmem:[%s943_s12 + $0x10] sm:$0xff] }
  0x21   : > { %362 = vperm.xlu2 %826, %v352_v4   ;;  %759 = vmatpush.bf16.msra.mxu2 %v715_v5  ;;  %v711_v14 = vld [vmem:[%s957_s25 + $0x18] sm:$0xff]  ;;  %v717_v15 = vld [vmem:[%s938_s9] sm:$0xff]   ;;  %v710_v19 = vld [vmem:[%s957_s25 + $0x10] sm:$0xff] }
  0x22   : > { %760 = vmatpush.bf16.msra.mxu3 %v715_v5  ;;  %758 = vmatpush.bf16.msra.mxu1 %v715_v5  ;;  %v827_v16 = vld [vmem:[%s310_s28] ss:$0 sm:$0xff]  ;;  %v718_v17 = vunpack.c.l.bf16 %v717_v15  ;;  %v709_v21 = vld [vmem:[%s957_s25 + $0x8] sm:$0xff]  ;;  %v754_v23 = vld [vmem:[%s938_s9 + $0x18] sm:$0xff]   ;;  %v719_v27 = vunpack.c.h.bf16 %v717_v15 }
  0x23   : > { %v828_v18 = vld [vmem:[%s331_s6] ss:$0 sm:$0xff]  ;;  %v753_v24 = vld [vmem:[%s938_s9 + $0x10] sm:$0xff]   ;;  %v730_v25 = vunpack.c.l.bf16 %v754_v23  ;;  %v731_v35 = vunpack.c.h.bf16 %v754_v23  ;;  %v752_v41 = vld [vmem:[%s938_s9 + $0x8] sm:$0xff]  }
  0x24   : > { %488 = vmatpush.bf16.msra.mxu0 %v714_v6  ;;  %v323_v20 = vmul.f32 %v827_v16, %v718_v17  ;;  %v726_v26 = vunpack.c.l.bf16 %v753_v24  ;;  %v324_v30 = vmul.f32 %v827_v16, %v719_v27  ;;  %v708_v34 = vld [vmem:[%s957_s25] sm:$0xff]  ;;  %v727_v36 = vunpack.c.h.bf16 %v753_v24 }
  0x25   : > { %762 = vmatpush.bf16.msra.mxu2 %v714_v6  ;;  %v329_v28 = vmul.f32 %v827_v16, %v730_v25  ;;  %v330_v37 = vmul.f32 %v827_v16, %v731_v35  ;;  %v723_v42 = vunpack.c.h.bf16 %v752_v41  ;;  %v722_v43 = vunpack.c.l.bf16 %v752_v41  ;;  %v409_v15 = vld [vmem:[#allocation2] sm:$0xff] }
  0x26   : > { %763 = vmatpush.bf16.msra.mxu3 %v714_v6  ;;  %761 = vmatpush.bf16.msra.mxu1 %v714_v6  ;;  %v336_v22 = vadd.f32 %v828_v18, %v323_v20  ;;  %v327_v29 = vmul.f32 %v827_v16, %v726_v26  ;;  %v337_v33 = vadd.f32 %v828_v18, %v324_v30  ;;  %v413_v27 = vld [vmem:[#allocation2 + $0x20] sm:$0xff] }
  0x27   : > { %397 = vperm.xlu1 %825, %v359_v7   ;;  %387 = vperm.xlu0 %824, %v357_v8   ;;  %v342_v31 = vadd.f32 %v828_v18, %v329_v28  ;;  %v328_v38 = vmul.f32 %v827_v16, %v727_v36  ;;  %v343_v39 = vadd.f32 %v828_v18, %v330_v37  ;;  %v415_v28 = vld [vmem:[#allocation2 + $0x38] sm:$0xff] }
  0x28   : > { %489 = vmatpush.bf16.msra.mxu0 %v713_v9  ;;  %v340_v32 = vadd.f32 %v828_v18, %v327_v29  ;;  %v326_v45 = vmul.f32 %v827_v16, %v723_v42  ;;  %v325_v46 = vmul.f32 %v827_v16, %v722_v43  ;;  %v344_v47 = vmax.f32 %v336_v22, 0.0  ;;  %v410_v22 = vld [vmem:[#allocation2 + $0x18] sm:$0xff] }
  0x29   : > { %367 = vperm.xlu2 %826, %v353_v10   ;;  %765 = vmatpush.bf16.msra.mxu2 %v713_v9  ;;  %v341_v40 = vadd.f32 %v828_v18, %v328_v38  ;;  %v345_v50 = vmax.f32 %v337_v33, 0.0  ;;  %v350_v57 = vmax.f32 %v342_v31, 0.0  ;;  %v351_v59 = vmax.f32 %v343_v39, 0.0  ;;  %v411_v31 = vld [vmem:[#allocation2 + $0x10] sm:$0xff] }
  0x2a   : > { %766 = vmatpush.bf16.msra.mxu3 %v713_v9  ;;  %764 = vmatpush.bf16.msra.mxu1 %v713_v9  ;;  %v339_v48 = vadd.f32 %v828_v18, %v326_v45  ;;  %v338_v49 = vadd.f32 %v828_v18, %v325_v46  ;;  %v348_v58 = vmax.f32 %v340_v32, 0.0  ;;  %v412_v18 = vld [vmem:[#allocation2 + $0x8] sm:$0xff] }
  0x2b   : > { %v349_v60 = vmax.f32 %v341_v40, 0.0 }
  0x2c   : > { %490 = vmatpush.bf16.msra.mxu0 %v712_v11  ;;  %v347_v5 = vmax.f32 %v339_v48, 0.0  ;;  %v346_v6 = vmax.f32 %v338_v49, 0.0 }
  0x2d   : > { %768 = vmatpush.bf16.msra.mxu2 %v712_v11 }
  0x2e   : > { %769 = vmatpush.bf16.msra.mxu3 %v712_v11  ;;  %767 = vmatpush.bf16.msra.mxu1 %v712_v11 }
  0x2f   : > { %377 = vperm.xlu1 %825, %v355_v12   ;;  %372 = vperm.xlu0 %824, %v354_v13   ;;  %v408_v12 = vld [vmem:[#allocation2 + $0x30] sm:$0xff] }
  0x30   : > { %491 = vmatpush.bf16.msra.mxu0 %v711_v14 }
  0x31   : > { %771 = vmatpush.bf16.msra.mxu2 %v711_v14 }
  0x32   : > { %772 = vmatpush.bf16.msra.mxu3 %v711_v14  ;;  %770 = vmatpush.bf16.msra.mxu1 %v711_v14 }
  0x34   : > { %492 = vmatpush.bf16.msra.mxu0 %v710_v19 }
  0x35   : > { %774 = vmatpush.bf16.msra.mxu2 %v710_v19 }
  0x36   : > { %775 = vmatpush.bf16.msra.mxu3 %v710_v19  ;;  %773 = vmatpush.bf16.msra.mxu1 %v710_v19  ;;  %v414_v19 = vld [vmem:[#allocation2 + $0x28] sm:$0xff] }
  0x38   : > { %493 = vmatpush.bf16.msra.mxu0 %v709_v21 }
  0x39   : > { %777 = vmatpush.bf16.msra.mxu2 %v709_v21 }
  0x3a   : > { %778 = vmatpush.bf16.msra.mxu3 %v709_v21  ;;  %776 = vmatpush.bf16.msra.mxu1 %v709_v21 }
  0x3c   : > { %494 = vmatpush.bf16.msra.mxu0 %v708_v34 }
  0x3d   : > { %780 = vmatpush.bf16.msra.mxu2 %v708_v34 }
  0x3e   : > { %781 = vmatpush.bf16.msra.mxu3 %v708_v34  ;;  %779 = vmatpush.bf16.msra.mxu1 %v708_v34 }
  0x7b   : > { %v363_v44 = vpop.permute.xlu2 %362 }
  0x7c   : > { %v400_v51 = vmul.f32 %v363_v44, %v344_v47 }
  0x83   : > { %v368_v52 = vpop.permute.xlu2 %367 }
  0x84   : > { %v401_v53 = vmul.f32 %v368_v52, %v345_v50 }
  0x86   : > { %v416_v54 = vpack.c.bf16 %v401_v53, %v400_v51 }
  0x88   : > { %495 = vmatmul.bf16.vlgmr.msra.gmra.mxu0 %v416_v54 }
  0x91   : > { %v393_v55 = vpop.permute.xlu1 %392  ;;  %v383_v56 = vpop.permute.xlu0 %382 }
  0x92   : > { %v406_v63 = vmul.f32 %v393_v55, %v350_v57  ;;  %v404_v0 = vmul.f32 %v383_v56, %v348_v58 }
  0x99   : > { %v398_v61 = vpop.permute.xlu1 %397  ;;  %v388_v62 = vpop.permute.xlu0 %387 }
  0x9a   : > { %v407_v1 = vmul.f32 %v398_v61, %v351_v59  ;;  %v405_v2 = vmul.f32 %v388_v62, %v349_v60 }
  0x9c   : > { %v418_v3 = vpack.c.bf16 %v405_v2, %v404_v0  ;;  %v419_v4 = vpack.c.bf16 %v407_v1, %v406_v63 }
  0x9e   : > { %505 = vmatmul.bf16.vlgmr.msra.gmra.mxu2 %v418_v3  ;;  %510 = vmatmul.bf16.vlgmr.msra.gmra.mxu3 %v419_v4 }
  0xa1   : > { %v378_v7 = vpop.permute.xlu1 %377  ;;  %v373_v8 = vpop.permute.xlu0 %372 }
  0xa2   : > { %v403_v9 = vmul.f32 %v378_v7, %v347_v5  ;;  %v402_v10 = vmul.f32 %v373_v8, %v346_v6 }
  0xa4   : > { %v417_v11 = vpack.c.bf16 %v403_v9, %v402_v10 }
  0xa6   : > { %500 = vmatmul.bf16.vlgmr.msra.gmra.mxu1 %v417_v11 }
 0x105   : > { %v496_v13 = vpop.f32.mrf.mxu0 }
 0x106   : > { %v516_v14 = vadd.f32 %v496_v13, %v408_v12 }
 0x108   : > { %524 = vst [vmem:[#allocation2 + $0x30] sm:$0xff] %v516_v14 }
 0x10d   : > { %v498_v16 = vpop.f32.mrf.mxu0 }
 0x10e   : > { %v517_v17 = vadd.f32 %v498_v16, %v409_v15 }
 0x110   : > { %525 = vst [vmem:[#allocation2] sm:$0xff] %v517_v17 }
 0x121   : > { %v506_v20 = vpop.f32.mrf.mxu2  ;;  %v511_v21 = vpop.f32.mrf.mxu3 }
 0x122   : > { %v520_v23 = vadd.f32 %v506_v20, %v412_v18  ;;  %v522_v24 = vadd.f32 %v511_v21, %v414_v19 }
 0x123   : > { %v501_v25 = vpop.f32.mrf.mxu1 }
 0x124   : > { %528 = vst [vmem:[#allocation2 + $0x8] sm:$0xff] %v520_v23  ;;  %v518_v26 = vadd.f32 %v501_v25, %v410_v22 }
 0x125   : > { %530 = vst [vmem:[#allocation2 + $0x28] sm:$0xff] %v522_v24 }
 0x126   : > { %526 = vst [vmem:[#allocation2 + $0x18] sm:$0xff] %v518_v26 }
 0x129   : > { %v508_v29 = vpop.f32.mrf.mxu2  ;;  %v513_v30 = vpop.f32.mrf.mxu3 }
 0x12a   : > { %v521_v32 = vadd.f32 %v508_v29, %v413_v27  ;;  %v523_v33 = vadd.f32 %v513_v30, %v415_v28  ;;  %535 = sbr.rel (%p704_p8) target bundleno = 313 (0x139), region = 48 }
 0x12b   : > { %v503_v34 = vpop.f32.mrf.mxu1 }
 0x12c   : > { %529 = vst [vmem:[#allocation2 + $0x20] sm:$0xff] %v521_v32  ;;  %v519_v35 = vadd.f32 %v503_v34, %v411_v31 }
 0x12d   : > { %531 = vst [vmem:[#allocation2 + $0x38] sm:$0xff] %v523_v33 }
 0x12e   : > { %527 = vst [vmem:[#allocation2 + $0x10] sm:$0xff] %v519_v35 }
 0x12f   : > { %v536_v36 = vld [vmem:[#allocation2 + $0x30] sm:$0xff]  ;;  %v537_v37 = vld [vmem:[#allocation2] sm:$0xff]  ;;  %v538_v38 = vld [vmem:[#allocation2 + $0x18] sm:$0xff] }
 0x130   : > { %v735_v39 = vpack.c.bf16 %v537_v37, %v536_v36  ;;  %v540_v41 = vld [vmem:[#allocation2 + $0x8] sm:$0xff] }
 0x131   : > { %v542_v45 = vld [vmem:[#allocation2 + $0x28] sm:$0xff] }
 0x132   : > { %736 = vst [vmem:[%s948_s15] sm:$0xff] %v735_v39  }
 0x133   : > { %v541_v42 = vld [vmem:[#allocation2 + $0x20] sm:$0xff] }
 0x134   : > { %v745_v44 = vpack.c.bf16 %v541_v42, %v540_v41  ;;  %v543_v46 = vld [vmem:[#allocation2 + $0x38] sm:$0xff] }
 0x135   : > { %v539_v40 = vld [vmem:[#allocation2 + $0x10] sm:$0xff]  ;;  %v750_v47 = vpack.c.bf16 %v543_v46, %v542_v45 }
 0x136   : > { %v740_v43 = vpack.c.bf16 %v539_v40, %v538_v38  ;;  %756 = vst [vmem:[%s948_s15 + $0x10] sm:$0xff] %v745_v44  }
 0x137   : > { %757 = vst [vmem:[%s948_s15 + $0x18] sm:$0xff] %v750_v47  }
 0x138   : > { %755 = vst [vmem:[%s948_s15 + $0x8] sm:$0xff] %v740_v43  }
 0x139 PF: > { %s15_s22 = sadd.s32 1, %s867_s22   ;;  %s1021_s18 = smov %s859_s20 }
 0x13a   : > { %p12_p9 = scmp.ge.s32.totalorder %s15_s22, 20   ;;  %s1022_s19 = smov %s863_s21 }
 0x13b   : > { %s1023_s20 = smov %s1026_s23  ;;  %s1024_s21 = smov %s1030_s24 }
 0x13c   :  { %14 = sbr.rel (!%p12_p9) target bundleno = 3 (0x3), region = 84 }

// kernel: _lambda_.10
= control target key start
LH: loop header
LB: loop body
LE: loop exit
PB: predicated region body
PF: predicated region fallthrough
CT: control target
= control target key end

     0   :  { %s197_s0 = inlined_call_operand.vmem [shape: bf16[128,128], index: 0, kind: input, shape index: {}]   ;;  %s198_s1 = inlined_call_operand.vmem [shape: f32[2,8,128], index: 1, kind: output, shape index: {}]  }
   0x1   :  { %v118_v0 = vld [vmem:[%s197_s0] sm:$0xff]   ;;  %v149_v1 = vld [vmem:[%s197_s0 + $0x8] sm:$0xff]   ;;  %v150_v5 = vld [vmem:[%s197_s0 + $0x10] sm:$0xff]  }
   0x2   :  { %v119_v2 = vunpack.c.l.bf16 %v118_v0  ;;  %v120_v3 = vunpack.c.h.bf16 %v118_v0  ;;  %v123_v4 = vunpack.c.l.bf16 %v149_v1  ;;  %v124_v6 = vunpack.c.h.bf16 %v149_v1  ;;  %v151_v13 = vld [vmem:[%s197_s0 + $0x18] sm:$0xff]   ;;  %v152_v22 = vld [vmem:[%s197_s0 + $0x20] sm:$0xff]   ;;  %v153_v31 = vld [vmem:[%s197_s0 + $0x28] sm:$0xff]  }
   0x3   :  { %v127_v10 = vunpack.c.l.bf16 %v150_v5  ;;  %v128_v14 = vunpack.c.h.bf16 %v150_v5  ;;  %v131_v18 = vunpack.c.l.bf16 %v151_v13  ;;  %v132_v23 = vunpack.c.h.bf16 %v151_v13  ;;  %v154_v40 = vld [vmem:[%s197_s0 + $0x30] sm:$0xff]   ;;  %v155_v49 = vld [vmem:[%s197_s0 + $0x38] sm:$0xff]  }
   0x4   :  { %v47_v7 = vadd.f32 %v120_v3, %v119_v2  ;;  %v72_v8 = vmul.f32 %v119_v2, %v119_v2  ;;  %v73_v9 = vmul.f32 %v120_v3, %v120_v3  ;;  %v74_v12 = vmul.f32 %v123_v4, %v123_v4 }
   0x5   :  { %v75_v16 = vmul.f32 %v124_v6, %v124_v6  ;;  %v76_v20 = vmul.f32 %v127_v10, %v127_v10  ;;  %v77_v25 = vmul.f32 %v128_v14, %v128_v14  ;;  %v135_v27 = vunpack.c.l.bf16 %v152_v22 }
   0x6   :  { %v48_v11 = vadd.f32 %v123_v4, %v47_v7  ;;  %v88_v17 = vadd.f32 %v73_v9, %v72_v8  ;;  %v78_v29 = vmul.f32 %v131_v18, %v131_v18  ;;  %v136_v32 = vunpack.c.h.bf16 %v152_v22 }
   0x7   :  { %v79_v34 = vmul.f32 %v132_v23, %v132_v23  ;;  %v139_v36 = vunpack.c.l.bf16 %v153_v31  ;;  %v80_v38 = vmul.f32 %v135_v27, %v135_v27  ;;  %v140_v41 = vunpack.c.h.bf16 %v153_v31 }
   0x8   :  { %v49_v15 = vadd.f32 %v124_v6, %v48_v11  ;;  %v89_v21 = vadd.f32 %v88_v17, %v74_v12  ;;  %v81_v43 = vmul.f32 %v136_v32, %v136_v32  ;;  %v143_v45 = vunpack.c.l.bf16 %v154_v40 }
   0x9   :  { %v82_v47 = vmul.f32 %v139_v36, %v139_v36  ;;  %v144_v50 = vunpack.c.h.bf16 %v154_v40  ;;  %v83_v52 = vmul.f32 %v140_v41, %v140_v41  ;;  %v147_v54 = vunpack.c.l.bf16 %v155_v49 }
   0xa   :  { %v50_v19 = vadd.f32 %v127_v10, %v49_v15  ;;  %v90_v26 = vadd.f32 %v89_v21, %v75_v16  ;;  %v84_v56 = vmul.f32 %v143_v45, %v143_v45  ;;  %v148_v58 = vunpack.c.h.bf16 %v155_v49 }
   0xb   :  { %v85_v60 = vmul.f32 %v144_v50, %v144_v50  ;;  %v86_v63 = vmul.f32 %v147_v54, %v147_v54 }
   0xc   :  { %v51_v24 = vadd.f32 %v128_v14, %v50_v19  ;;  %v91_v30 = vadd.f32 %v90_v26, %v76_v20  ;;  %v87_v2 = vmul.f32 %v148_v58, %v148_v58 }
   0xe   :  { %v52_v28 = vadd.f32 %v131_v18, %v51_v24  ;;  %v92_v35 = vadd.f32 %v91_v30, %v77_v25 }
  0x10   :  { %v53_v33 = vadd.f32 %v132_v23, %v52_v28  ;;  %v93_v39 = vadd.f32 %v92_v35, %v78_v29 }
  0x12   :  { %v54_v37 = vadd.f32 %v135_v27, %v53_v33  ;;  %v94_v44 = vadd.f32 %v93_v39, %v79_v34 }
  0x14   :  { %v55_v42 = vadd.f32 %v136_v32, %v54_v37  ;;  %v95_v48 = vadd.f32 %v94_v44, %v80_v38 }
  0x16   :  { %v56_v46 = vadd.f32 %v139_v36, %v55_v42  ;;  %v96_v53 = vadd.f32 %v95_v48, %v81_v43 }
  0x18   :  { %v57_v51 = vadd.f32 %v140_v41, %v56_v46  ;;  %v97_v57 = vadd.f32 %v96_v53, %v82_v47 }
  0x1a   :  { %v58_v55 = vadd.f32 %v143_v45, %v57_v51  ;;  %v98_v61 = vadd.f32 %v97_v57, %v83_v52 }
  0x1c   :  { %v59_v59 = vadd.f32 %v144_v50, %v58_v55  ;;  %v99_v0 = vadd.f32 %v98_v61, %v84_v56 }
  0x1e   :  { %v60_v62 = vadd.f32 %v147_v54, %v59_v59  ;;  %v100_v3 = vadd.f32 %v99_v0, %v85_v60 }
  0x20   :  { %v61_v1 = vadd.f32 %v148_v58, %v60_v62  ;;  %v101_v5 = vadd.f32 %v100_v3, %v86_v63 }
  0x22   :  { %v62_v4 = vrot.slane %v61_v1, 4  ;;  %v102_v7 = vadd.f32 %v101_v5, %v87_v2 }
  0x24   :  { %v63_v6 = vadd.f32 %v62_v4, %v61_v1  ;;  %v103_v9 = vrot.slane %v102_v7, 4 }
  0x26   :  { %v64_v8 = vrot.slane %v63_v6, 2  ;;  %v104_v11 = vadd.f32 %v103_v9, %v102_v7 }
  0x28   :  { %v65_v10 = vadd.f32 %v64_v8, %v63_v6  ;;  %v105_v13 = vrot.slane %v104_v11, 2 }
  0x2a   :  { %v66_v12 = vrot.slane %v65_v10, 1  ;;  %v106_v15 = vadd.f32 %v105_v13, %v104_v11 }
  0x2c   :  { %v67_v14 = vadd.f32 %v66_v12, %v65_v10  ;;  %v107_v16 = vrot.slane %v106_v15, 1 }
  0x2e   :  { %69 = vst [vmem:[%s198_s1] sm:$0xff] %v67_v14  ;;  %v108_v17 = vadd.f32 %v107_v16, %v106_v15 }
  0x30   :  { %116 = vst [vmem:[%s198_s1 + $0x8] sm:$0xff] %v108_v17 }

// kernel: _lambda_.11
= control target key start
LH: loop header
LB: loop body
LE: loop exit
PB: predicated region body
PF: predicated region fallthrough
CT: control target
= control target key end

     0   :  { %s901_s18 = smov 0   ;;  %s903_s19 = smov 0   ;;  %s1015_s0 = inlined_call_operand.vmem [shape: bf16[10,128,128], index: 0, kind: input, shape index: {}]   ;;  %s1016_s1 = inlined_call_operand.vmem [shape: bf16[10,128,128], index: 1, kind: input, shape index: {}]   ;;  %s1017_s2 = inlined_call_operand.vmem [shape: f32[10,1,128], index: 2, kind: input, shape index: {}]   ;;  %s1018_s3 = inlined_call_operand.vmem [shape: f32[10,1,128], index: 3, kind: input, shape index: {}]   ;;  %s1019_s4 = inlined_call_operand.vmem [shape: f32[10,128,1], index: 4, kind: input, shape index: {}]   ;;  %s1020_s5 = inlined_call_operand.vmem [shape: bf16[128,128], index: 5, kind: output, shape index: {}]  }
   0x1   :  { %s905_s20 = smov 0   ;;  %s907_s21 = smov 0  }
   0x2   :  { %s909_s22 = smov 0  }
   0x3 LB: > { %s24_s23 = sadd.s32 1, %s859_s20  ;;  %s27_s24 = sadd.s32 1, %s863_s21  ;;  %s867_s22 = sphi %s909_s22, %s15_s22   ;;  %s863_s21 = sphi %s907_s21, %s1024_s21   ;;  %s859_s20 = sphi %s905_s20, %s1023_s20   ;;  %s855_s19 = sphi %s903_s19, %s1022_s19   ;;  %s851_s18 = sphi %s901_s18, %s1021_s18  }
   0x4   : > { %p25_p0 = scmp.ge.s32.totalorder %s24_s23, 10  ;;  %p660_p1 = scmp.ge.s32.totalorder %s867_s22, 1 }
   0x5   : > { %p223_p2 = scmp.lt.s32.totalorder %s867_s22, 21 }
   0x6   : > { %s1026_s23 = smov (%p25_p0, %s24_s23), 0  ;;  %s1028_s24 = smov (!%p25_p0, %s27_s24), %s863_s21 }
   0x7   : > { %p224_p3 = pnand %p660_p1, %p223_p2  ;;  %p29_p4 = scmp.ge.s32.totalorder %s1028_s24, 2 }
   0x8   : > { %s661_s25 = sshll.u32 (!%p224_p3), %s855_s19, 3  ;;  %p265_p5 = scmp.lt.s32.totalorder (!%p224_p3), %s851_s18, 9 }
   0x9   : > { %s1030_s24 = smov (%p29_p4, %s1028_s24), 0  ;;  %227 = sbr.rel (%p224_p3) target bundleno = 313 (0x139), region = 40 }
   0xa   : > { %p267_p6 = scmp.lt.s32.totalorder (!%p224_p3), %s661_s25, 15  ;;  %p669_p7 = scmp.ne.s32.totalorder (!%p224_p3), %s851_s18, 0 }
   0xe   : > { %s266_s26 = scalar_select %p265_p5, %s851_s18, 9 }
   0xf   : > { %s1032_s25 = smov (!%p267_p6, %s661_s25), 15  ;;  %293 = sbr.rel (%p669_p7) target bundleno = 29 (0x1d), region = 44 }
  0x10   : > { %s662_s27 = sshll.u32 %s266_s26, 4  ;;  %s668_s29 = sshll.u32 %s1032_s25, 2 }
  0x11   : > { %s270_s28 = sadd.s32 %s662_s27, %s1032_s25  ;;  %s948_s15 = scalar_lea.vmem %s1020_s5, %s668_s29 }
  0x12   : > { %s663_s30 = sshll.u32 %s270_s28, 2  ;;  %s666_s6 = sshll.u32 %s270_s28, 3 }
  0x13   : > { %s938_s9 = scalar_lea.vmem %s1015_s0, %s663_s30  ;;  %s943_s12 = scalar_lea.vmem %s1019_s4, %s666_s6 }
  0x14   : > { %v869_v0 = vmov 0.0  }
  0x15   : > { %294 = vst [vmem:[#allocation2 + $0x30] sm:$0xff] %v869_v0 }
  0x16   : > { %295 = vst [vmem:[#allocation2] sm:$0xff] %v869_v0 }
  0x17   : > { %296 = vst [vmem:[#allocation2 + $0x18] sm:$0xff] %v869_v0 }
  0x18   : > { %297 = vst [vmem:[#allocation2 + $0x10] sm:$0xff] %v869_v0 }
  0x19   : > { %298 = vst [vmem:[#allocation2 + $0x8] sm:$0xff] %v869_v0 }
  0x1a   : > { %299 = vst [vmem:[#allocation2 + $0x20] sm:$0xff] %v869_v0 }
  0x1b   : > { %300 = vst [vmem:[#allocation2 + $0x28] sm:$0xff] %v869_v0 }
  0x1c   : > { %301 = vst [vmem:[#allocation2 + $0x38] sm:$0xff] %v869_v0 }
  0x1d PF: > { %v358_v1 = vld [vmem:[%s943_s12 + $0x30] sm:$0xff]  ;;  %v356_v2 = vld [vmem:[%s943_s12 + $0x20] sm:$0xff]  ;;  %s707_s16 = sshll.u32 %s851_s18, 6  ;;  %v870_v3 = vmov 0   ;;  %s310_s28 = scalar_lea.vmem %s1017_s2, %s851_s18  ;;  %v359_v7 = vld [vmem:[%s943_s12 + $0x38] sm:$0xff] }
  0x1e   : > { %825 = vset.pattern.permute.xlu1 %v870_v3  ;;  %824 = vset.pattern.permute.xlu0 %v870_v3  ;;  %s957_s25 = scalar_lea.vmem %s1016_s1, %s707_s16  ;;  %v352_v4 = vld [vmem:[%s943_s12] sm:$0xff]  ;;  %s331_s6 = scalar_lea.vmem %s1018_s3, %s851_s18  ;;  %v357_v8 = vld [vmem:[%s943_s12 + $0x28] sm:$0xff]  ;;  %v355_v12 = vld [vmem:[%s943_s12 + $0x18] sm:$0xff] }
  0x1f   : > { %392 = vperm.xlu1 %825, %v358_v1   ;;  %382 = vperm.xlu0 %824, %v356_v2   ;;  %v715_v5 = vld [vmem:[%s957_s25 + $0x38] sm:$0xff]  ;;  %v714_v6 = vld [vmem:[%s957_s25 + $0x30] sm:$0xff]  ;;  %v713_v9 = vld [vmem:[%s957_s25 + $0x28] sm:$0xff]  ;;  %p704_p8 = scmp.ne.s32.totalorder %s851_s18, 9 }
  0x20   : > { %826 = vset.pattern.permute.xlu2 %v870_v3  ;;  %487 = vmatpush.bf16.msra.mxu0 %v715_v5  ;;  %v353_v10 = vld [vmem:[%s943_s12 + $0x8] sm:$0xff]  ;;  %v712_v11 = vld [vmem:[%s957_s25 + $0x20] sm:$0xff]  ;;  %v354_v13 = vld [vmem:[%s943_s12 + $0x10] sm:$0xff] }
  0x21   : > { %362 = vperm.xlu2 %826, %v352_v4   ;;  %759 = vmatpush.bf16.msra.mxu2 %v715_v5  ;;  %v711_v14 = vld [vmem:[%s957_s25 + $0x18] sm:$0xff]  ;;  %v717_v15 = vld [vmem:[%s938_s9] sm:$0xff]   ;;  %v710_v19 = vld [vmem:[%s957_s25 + $0x10] sm:$0xff] }
  0x22   : > { %760 = vmatpush.bf16.msra.mxu3 %v715_v5  ;;  %758 = vmatpush.bf16.msra.mxu1 %v715_v5  ;;  %v827_v16 = vld [vmem:[%s310_s28] ss:$0 sm:$0xff]  ;;  %v718_v17 = vunpack.c.l.bf16 %v717_v15  ;;  %v709_v21 = vld [vmem:[%s957_s25 + $0x8] sm:$0xff]  ;;  %v754_v23 = vld [vmem:[%s938_s9 + $0x18] sm:$0xff]   ;;  %v719_v27 = vunpack.c.h.bf16 %v717_v15 }
  0x23   : > { %v828_v18 = vld [vmem:[%s331_s6] ss:$0 sm:$0xff]  ;;  %v753_v24 = vld [vmem:[%s938_s9 + $0x10] sm:$0xff]   ;;  %v730_v25 = vunpack.c.l.bf16 %v754_v23  ;;  %v731_v35 = vunpack.c.h.bf16 %v754_v23  ;;  %v752_v41 = vld [vmem:[%s938_s9 + $0x8] sm:$0xff]  }
  0x24   : > { %488 = vmatpush.bf16.msra.mxu0 %v714_v6  ;;  %v323_v20 = vmul.f32 %v827_v16, %v718_v17  ;;  %v726_v26 = vunpack.c.l.bf16 %v753_v24  ;;  %v324_v30 = vmul.f32 %v827_v16, %v719_v27  ;;  %v708_v34 = vld [vmem:[%s957_s25] sm:$0xff]  ;;  %v727_v36 = vunpack.c.h.bf16 %v753_v24 }
  0x25   : > { %762 = vmatpush.bf16.msra.mxu2 %v714_v6  ;;  %v329_v28 = vmul.f32 %v827_v16, %v730_v25  ;;  %v330_v37 = vmul.f32 %v827_v16, %v731_v35  ;;  %v723_v42 = vunpack.c.h.bf16 %v752_v41  ;;  %v722_v43 = vunpack.c.l.bf16 %v752_v41  ;;  %v409_v15 = vld [vmem:[#allocation2] sm:$0xff] }
  0x26   : > { %763 = vmatpush.bf16.msra.mxu3 %v714_v6  ;;  %761 = vmatpush.bf16.msra.mxu1 %v714_v6  ;;  %v336_v22 = vadd.f32 %v828_v18, %v323_v20  ;;  %v327_v29 = vmul.f32 %v827_v16, %v726_v26  ;;  %v337_v33 = vadd.f32 %v828_v18, %v324_v30  ;;  %v413_v27 = vld [vmem:[#allocation2 + $0x20] sm:$0xff] }
  0x27   : > { %397 = vperm.xlu1 %825, %v359_v7   ;;  %387 = vperm.xlu0 %824, %v357_v8   ;;  %v342_v31 = vadd.f32 %v828_v18, %v329_v28  ;;  %v328_v38 = vmul.f32 %v827_v16, %v727_v36  ;;  %v343_v39 = vadd.f32 %v828_v18, %v330_v37  ;;  %v415_v28 = vld [vmem:[#allocation2 + $0x38] sm:$0xff] }
  0x28   : > { %489 = vmatpush.bf16.msra.mxu0 %v713_v9  ;;  %v340_v32 = vadd.f32 %v828_v18, %v327_v29  ;;  %v326_v45 = vmul.f32 %v827_v16, %v723_v42  ;;  %v325_v46 = vmul.f32 %v827_v16, %v722_v43  ;;  %v344_v47 = vmax.f32 %v336_v22, 0.0  ;;  %v410_v22 = vld [vmem:[#allocation2 + $0x18] sm:$0xff] }
  0x29   : > { %367 = vperm.xlu2 %826, %v353_v10   ;;  %765 = vmatpush.bf16.msra.mxu2 %v713_v9  ;;  %v341_v40 = vadd.f32 %v828_v18, %v328_v38  ;;  %v345_v50 = vmax.f32 %v337_v33, 0.0  ;;  %v350_v57 = vmax.f32 %v342_v31, 0.0  ;;  %v351_v59 = vmax.f32 %v343_v39, 0.0  ;;  %v411_v31 = vld [vmem:[#allocation2 + $0x10] sm:$0xff] }
  0x2a   : > { %766 = vmatpush.bf16.msra.mxu3 %v713_v9  ;;  %764 = vmatpush.bf16.msra.mxu1 %v713_v9  ;;  %v339_v48 = vadd.f32 %v828_v18, %v326_v45  ;;  %v338_v49 = vadd.f32 %v828_v18, %v325_v46  ;;  %v348_v58 = vmax.f32 %v340_v32, 0.0  ;;  %v412_v18 = vld [vmem:[#allocation2 + $0x8] sm:$0xff] }
  0x2b   : > { %v349_v60 = vmax.f32 %v341_v40, 0.0 }
  0x2c   : > { %490 = vmatpush.bf16.msra.mxu0 %v712_v11  ;;  %v347_v5 = vmax.f32 %v339_v48, 0.0  ;;  %v346_v6 = vmax.f32 %v338_v49, 0.0 }
  0x2d   : > { %768 = vmatpush.bf16.msra.mxu2 %v712_v11 }
  0x2e   : > { %769 = vmatpush.bf16.msra.mxu3 %v712_v11  ;;  %767 = vmatpush.bf16.msra.mxu1 %v712_v11 }
  0x2f   : > { %377 = vperm.xlu1 %825, %v355_v12   ;;  %372 = vperm.xlu0 %824, %v354_v13   ;;  %v408_v12 = vld [vmem:[#allocation2 + $0x30] sm:$0xff] }
  0x30   : > { %491 = vmatpush.bf16.msra.mxu0 %v711_v14 }
  0x31   : > { %771 = vmatpush.bf16.msra.mxu2 %v711_v14 }
  0x32   : > { %772 = vmatpush.bf16.msra.mxu3 %v711_v14  ;;  %770 = vmatpush.bf16.msra.mxu1 %v711_v14 }
  0x34   : > { %492 = vmatpush.bf16.msra.mxu0 %v710_v19 }
  0x35   : > { %774 = vmatpush.bf16.msra.mxu2 %v710_v19 }
  0x36   : > { %775 = vmatpush.bf16.msra.mxu3 %v710_v19  ;;  %773 = vmatpush.bf16.msra.mxu1 %v710_v19  ;;  %v414_v19 = vld [vmem:[#allocation2 + $0x28] sm:$0xff] }
  0x38   : > { %493 = vmatpush.bf16.msra.mxu0 %v709_v21 }
  0x39   : > { %777 = vmatpush.bf16.msra.mxu2 %v709_v21 }
  0x3a   : > { %778 = vmatpush.bf16.msra.mxu3 %v709_v21  ;;  %776 = vmatpush.bf16.msra.mxu1 %v709_v21 }
  0x3c   : > { %494 = vmatpush.bf16.msra.mxu0 %v708_v34 }
  0x3d   : > { %780 = vmatpush.bf16.msra.mxu2 %v708_v34 }
  0x3e   : > { %781 = vmatpush.bf16.msra.mxu3 %v708_v34  ;;  %779 = vmatpush.bf16.msra.mxu1 %v708_v34 }
  0x7b   : > { %v363_v44 = vpop.permute.xlu2 %362 }
  0x7c   : > { %v400_v51 = vmul.f32 %v363_v44, %v344_v47 }
  0x83   : > { %v368_v52 = vpop.permute.xlu2 %367 }
  0x84   : > { %v401_v53 = vmul.f32 %v368_v52, %v345_v50 }
  0x86   : > { %v416_v54 = vpack.c.bf16 %v401_v53, %v400_v51 }
  0x88   : > { %495 = vmatmul.bf16.vlgmr.msra.gmra.mxu0 %v416_v54 }
  0x91   : > { %v393_v55 = vpop.permute.xlu1 %392  ;;  %v383_v56 = vpop.permute.xlu0 %382 }
  0x92   : > { %v406_v63 = vmul.f32 %v393_v55, %v350_v57  ;;  %v404_v0 = vmul.f32 %v383_v56, %v348_v58 }
  0x99   : > { %v398_v61 = vpop.permute.xlu1 %397  ;;  %v388_v62 = vpop.permute.xlu0 %387 }
  0x9a   : > { %v407_v1 = vmul.f32 %v398_v61, %v351_v59  ;;  %v405_v2 = vmul.f32 %v388_v62, %v349_v60 }
  0x9c   : > { %v418_v3 = vpack.c.bf16 %v405_v2, %v404_v0  ;;  %v419_v4 = vpack.c.bf16 %v407_v1, %v406_v63 }
  0x9e   : > { %505 = vmatmul.bf16.vlgmr.msra.gmra.mxu2 %v418_v3  ;;  %510 = vmatmul.bf16.vlgmr.msra.gmra.mxu3 %v419_v4 }
  0xa1   : > { %v378_v7 = vpop.permute.xlu1 %377  ;;  %v373_v8 = vpop.permute.xlu0 %372 }
  0xa2   : > { %v403_v9 = vmul.f32 %v378_v7, %v347_v5  ;;  %v402_v10 = vmul.f32 %v373_v8, %v346_v6 }
  0xa4   : > { %v417_v11 = vpack.c.bf16 %v403_v9, %v402_v10 }
  0xa6   : > { %500 = vmatmul.bf16.vlgmr.msra.gmra.mxu1 %v417_v11 }
 0x105   : > { %v496_v13 = vpop.f32.mrf.mxu0 }
 0x106   : > { %v516_v14 = vadd.f32 %v496_v13, %v408_v12 }
 0x108   : > { %524 = vst [vmem:[#allocation2 + $0x30] sm:$0xff] %v516_v14 }
 0x10d   : > { %v498_v16 = vpop.f32.mrf.mxu0 }
 0x10e   : > { %v517_v17 = vadd.f32 %v498_v16, %v409_v15 }
 0x110   : > { %525 = vst [vmem:[#allocation2] sm:$0xff] %v517_v17 }
 0x121   : > { %v506_v20 = vpop.f32.mrf.mxu2  ;;  %v511_v21 = vpop.f32.mrf.mxu3 }
 0x122   : > { %v520_v23 = vadd.f32 %v506_v20, %v412_v18  ;;  %v522_v24 = vadd.f32 %v511_v21, %v414_v19 }
 0x123   : > { %v501_v25 = vpop.f32.mrf.mxu1 }
 0x124   : > { %528 = vst [vmem:[#allocation2 + $0x8] sm:$0xff] %v520_v23  ;;  %v518_v26 = vadd.f32 %v501_v25, %v410_v22 }
 0x125   : > { %530 = vst [vmem:[#allocation2 + $0x28] sm:$0xff] %v522_v24 }
 0x126   : > { %526 = vst [vmem:[#allocation2 + $0x18] sm:$0xff] %v518_v26 }
 0x129   : > { %v508_v29 = vpop.f32.mrf.mxu2  ;;  %v513_v30 = vpop.f32.mrf.mxu3 }
 0x12a   : > { %v521_v32 = vadd.f32 %v508_v29, %v413_v27  ;;  %v523_v33 = vadd.f32 %v513_v30, %v415_v28  ;;  %535 = sbr.rel (%p704_p8) target bundleno = 313 (0x139), region = 48 }
 0x12b   : > { %v503_v34 = vpop.f32.mrf.mxu1 }
 0x12c   : > { %529 = vst [vmem:[#allocation2 + $0x20] sm:$0xff] %v521_v32  ;;  %v519_v35 = vadd.f32 %v503_v34, %v411_v31 }
 0x12d   : > { %531 = vst [vmem:[#allocation2 + $0x38] sm:$0xff] %v523_v33 }
 0x12e   : > { %527 = vst [vmem:[#allocation2 + $0x10] sm:$0xff] %v519_v35 }
 0x12f   : > { %v536_v36 = vld [vmem:[#allocation2 + $0x30] sm:$0xff]  ;;  %v537_v37 = vld [vmem:[#allocation2] sm:$0xff]  ;;  %v538_v38 = vld [vmem:[#allocation2 + $0x18] sm:$0xff] }
 0x130   : > { %v735_v39 = vpack.c.bf16 %v537_v37, %v536_v36  ;;  %v540_v41 = vld [vmem:[#allocation2 + $0x8] sm:$0xff] }
 0x131   : > { %v542_v45 = vld [vmem:[#allocation2 + $0x28] sm:$0xff] }
 0x132   : > { %736 = vst [vmem:[%s948_s15] sm:$0xff] %v735_v39  }
 0x133   : > { %v541_v42 = vld [vmem:[#allocation2 + $0x20] sm:$0xff] }
 0x134   : > { %v745_v44 = vpack.c.bf16 %v541_v42, %v540_v41  ;;  %v543_v46 = vld [vmem:[#allocation2 + $0x38] sm:$0xff] }
 0x135   : > { %v539_v40 = vld [vmem:[#allocation2 + $0x10] sm:$0xff]  ;;  %v750_v47 = vpack.c.bf16 %v543_v46, %v542_v45 }
 0x136   : > { %v740_v43 = vpack.c.bf16 %v539_v40, %v538_v38  ;;  %756 = vst [vmem:[%s948_s15 + $0x10] sm:$0xff] %v745_v44  }
 0x137   : > { %757 = vst [vmem:[%s948_s15 + $0x18] sm:$0xff] %v750_v47  }
 0x138   : > { %755 = vst [vmem:[%s948_s15 + $0x8] sm:$0xff] %v740_v43  }
 0x139 PF: > { %s15_s22 = sadd.s32 1, %s867_s22   ;;  %s1021_s18 = smov %s859_s20 }
 0x13a   : > { %p12_p9 = scmp.ge.s32.totalorder %s15_s22, 22   ;;  %s1022_s19 = smov %s863_s21 }
 0x13b   : > { %s1023_s20 = smov %s1026_s23  ;;  %s1024_s21 = smov %s1030_s24 }
 0x13c   :  { %14 = sbr.rel (!%p12_p9) target bundleno = 3 (0x3), region = 84 }

// kernel: _lambda_.15
= control target key start
LH: loop header
LB: loop body
LE: loop exit
PB: predicated region body
PF: predicated region fallthrough
CT: control target
= control target key end

     0   :  { %s1012_s21 = smov 0   ;;  %s1014_s22 = smov 0   ;;  %s1135_s0 = inlined_call_operand.vmem [shape: bf16[9,128,128], index: 0, kind: input, shape index: {}]   ;;  %s1136_s1 = inlined_call_operand.vmem [shape: bf16[9,128,128], index: 1, kind: input, shape index: {}]   ;;  %s1137_s2 = inlined_call_operand.vmem [shape: f32[9,1,128], index: 2, kind: input, shape index: {}]   ;;  %s1138_s3 = inlined_call_operand.vmem [shape: f32[9,1,128], index: 3, kind: input, shape index: {}]   ;;  %s1139_s4 = inlined_call_operand.vmem [shape: f32[9,128,1], index: 4, kind: input, shape index: {}]   ;;  %s1140_s5 = inlined_call_operand.vmem [shape: bf16[128,128], index: 5, kind: input, shape index: {}]   ;;  %s1141_s6 = inlined_call_operand.vmem [shape: bf16[128,128], index: 6, kind: output, shape index: {}]  }
   0x1   :  { %s1016_s23 = smov 0   ;;  %s1018_s24 = smov 0  }
   0x2   :  { %s1020_s25 = smov 0  }
   0x3 LB: > { %s25_s26 = sadd.s32 1, %s965_s23  ;;  %s28_s27 = sadd.s32 1, %s969_s24  ;;  %s973_s25 = sphi %s1020_s25, %s16_s25   ;;  %s969_s24 = sphi %s1018_s24, %s1145_s24   ;;  %s965_s23 = sphi %s1016_s23, %s1144_s23   ;;  %s961_s22 = sphi %s1014_s22, %s1143_s22   ;;  %s957_s21 = sphi %s1012_s21, %s1142_s21  }
   0x4   : > { %p26_p0 = scmp.ge.s32.totalorder %s25_s26, 9  ;;  %p745_p1 = scmp.ge.s32.totalorder %s973_s25, 1 }
   0x5   : > { %p259_p2 = scmp.lt.s32.totalorder %s973_s25, 19 }
   0x6   : > { %s1147_s26 = smov (%p26_p0, %s25_s26), 0  ;;  %s1149_s27 = smov (!%p26_p0, %s28_s27), %s969_s24 }
   0x7   : > { %p260_p3 = pnand %p745_p1, %p259_p2  ;;  %p30_p4 = scmp.ge.s32.totalorder %s1149_s27, 2 }
   0x8   : > { %s746_s28 = sshll.u32 (!%p260_p3), %s961_s22, 3  ;;  %p308_p5 = scmp.lt.s32.totalorder (!%p260_p3), %s957_s21, 8 }
   0x9   : > { %s1151_s27 = smov (%p30_p4, %s1149_s27), 0  ;;  %263 = sbr.rel (%p260_p3) target bundleno = 320 (0x140), region = 44 }
   0xa   : > { %p310_p6 = scmp.lt.s32.totalorder (!%p260_p3), %s746_s28, 15  ;;  %p756_p7 = scmp.ne.s32.totalorder (!%p260_p3), %s957_s21, 0 }
   0xe   : > { %s309_s29 = scalar_select %p308_p5, %s957_s21, 8 }
   0xf   : > { %s1153_s28 = smov (!%p310_p6, %s746_s28), 15 }
  0x10   : > { %s747_s30 = sshll.u32 %s309_s29, 4  ;;  %s753_s8 = sshll.u32 %s1153_s28, 2 }
  0x11   : > { %s313_s7 = sadd.s32 %s747_s30, %s1153_s28  ;;  %s1059_s19 = scalar_lea.vmem %s1140_s5, %s753_s8 }
  0x12   : > { %s748_s9 = sshll.u32 %s313_s7, 2  ;;  %s751_s10 = sshll.u32 %s313_s7, 3 }
  0x13   : > { %s1049_s13 = scalar_lea.vmem %s1135_s0, %s748_s9  ;;  %s1054_s16 = scalar_lea.vmem %s1139_s4, %s751_s10 }
  0x14   : > { %s1064_s28 = scalar_lea.vmem %s1141_s6, %s753_s8  ;;  %342 = sbr.rel (%p756_p7) target bundleno = 34 (0x22), region = 48 }
  0x19   : > { %v975_v0 = vmov 0.0  }
  0x1a   : > { %343 = vst [vmem:[#allocation2 + $0x30] sm:$0xff] %v975_v0 }
  0x1b   : > { %344 = vst [vmem:[#allocation2] sm:$0xff] %v975_v0 }
  0x1c   : > { %345 = vst [vmem:[#allocation2 + $0x18] sm:$0xff] %v975_v0 }
  0x1d   : > { %346 = vst [vmem:[#allocation2 + $0x10] sm:$0xff] %v975_v0 }
  0x1e   : > { %347 = vst [vmem:[#allocation2 + $0x8] sm:$0xff] %v975_v0 }
  0x1f   : > { %348 = vst [vmem:[#allocation2 + $0x20] sm:$0xff] %v975_v0 }
  0x20   : > { %349 = vst [vmem:[#allocation2 + $0x28] sm:$0xff] %v975_v0 }
  0x21   : > { %350 = vst [vmem:[#allocation2 + $0x38] sm:$0xff] %v975_v0 }
  0x22 PF: > { %v407_v1 = vld [vmem:[%s1054_s16 + $0x30] sm:$0xff]  ;;  %v405_v2 = vld [vmem:[%s1054_s16 + $0x20] sm:$0xff]  ;;  %s794_s29 = sshll.u32 %s957_s21, 6  ;;  %v976_v3 = vmov 0   ;;  %s359_s11 = scalar_lea.vmem %s1137_s2, %s957_s21  ;;  %v408_v7 = vld [vmem:[%s1054_s16 + $0x38] sm:$0xff] }
  0x23   : > { %931 = vset.pattern.permute.xlu1 %v976_v3  ;;  %930 = vset.pattern.permute.xlu0 %v976_v3  ;;  %s1073_s8 = scalar_lea.vmem %s1136_s1, %s794_s29  ;;  %v401_v4 = vld [vmem:[%s1054_s16] sm:$0xff]  ;;  %s380_s15 = scalar_lea.vmem %s1138_s3, %s957_s21  ;;  %v406_v8 = vld [vmem:[%s1054_s16 + $0x28] sm:$0xff]  ;;  %v404_v12 = vld [vmem:[%s1054_s16 + $0x18] sm:$0xff] }
  0x24   : > { %441 = vperm.xlu1 %931, %v407_v1   ;;  %431 = vperm.xlu0 %930, %v405_v2   ;;  %v802_v5 = vld [vmem:[%s1073_s8 + $0x38] sm:$0xff]  ;;  %v801_v6 = vld [vmem:[%s1073_s8 + $0x30] sm:$0xff]  ;;  %v800_v9 = vld [vmem:[%s1073_s8 + $0x28] sm:$0xff]  ;;  %p791_p8 = scmp.ne.s32.totalorder %s957_s21, 8 }
  0x25   : > { %932 = vset.pattern.permute.xlu2 %v976_v3  ;;  %536 = vmatpush.bf16.msra.mxu0 %v802_v5  ;;  %v402_v10 = vld [vmem:[%s1054_s16 + $0x8] sm:$0xff]  ;;  %v799_v11 = vld [vmem:[%s1073_s8 + $0x20] sm:$0xff]  ;;  %v403_v13 = vld [vmem:[%s1054_s16 + $0x10] sm:$0xff] }
  0x26   : > { %411 = vperm.xlu2 %932, %v401_v4   ;;  %865 = vmatpush.bf16.msra.mxu2 %v802_v5  ;;  %v798_v14 = vld [vmem:[%s1073_s8 + $0x18] sm:$0xff]  ;;  %v804_v15 = vld [vmem:[%s1049_s13] sm:$0xff]   ;;  %v797_v19 = vld [vmem:[%s1073_s8 + $0x10] sm:$0xff] }
  0x27   : > { %866 = vmatpush.bf16.msra.mxu3 %v802_v5  ;;  %864 = vmatpush.bf16.msra.mxu1 %v802_v5  ;;  %v933_v16 = vld [vmem:[%s359_s11] ss:$0 sm:$0xff]  ;;  %v805_v17 = vunpack.c.l.bf16 %v804_v15  ;;  %v796_v21 = vld [vmem:[%s1073_s8 + $0x8] sm:$0xff]  ;;  %v857_v23 = vld [vmem:[%s1049_s13 + $0x18] sm:$0xff]   ;;  %v806_v27 = vunpack.c.h.bf16 %v804_v15 }
  0x28   : > { %v934_v18 = vld [vmem:[%s380_s15] ss:$0 sm:$0xff]  ;;  %v856_v24 = vld [vmem:[%s1049_s13 + $0x10] sm:$0xff]   ;;  %v817_v25 = vunpack.c.l.bf16 %v857_v23  ;;  %v818_v35 = vunpack.c.h.bf16 %v857_v23  ;;  %v855_v41 = vld [vmem:[%s1049_s13 + $0x8] sm:$0xff]  }
  0x29   : > { %537 = vmatpush.bf16.msra.mxu0 %v801_v6  ;;  %v372_v20 = vmul.f32 %v933_v16, %v805_v17  ;;  %v813_v26 = vunpack.c.l.bf16 %v856_v24  ;;  %v373_v30 = vmul.f32 %v933_v16, %v806_v27  ;;  %v795_v34 = vld [vmem:[%s1073_s8] sm:$0xff]  ;;  %v814_v36 = vunpack.c.h.bf16 %v856_v24 }
  0x2a   : > { %868 = vmatpush.bf16.msra.mxu2 %v801_v6  ;;  %v378_v28 = vmul.f32 %v933_v16, %v817_v25  ;;  %v379_v37 = vmul.f32 %v933_v16, %v818_v35  ;;  %v810_v42 = vunpack.c.h.bf16 %v855_v41  ;;  %v809_v43 = vunpack.c.l.bf16 %v855_v41  ;;  %v458_v15 = vld [vmem:[#allocation2] sm:$0xff] }
  0x2b   : > { %869 = vmatpush.bf16.msra.mxu3 %v801_v6  ;;  %867 = vmatpush.bf16.msra.mxu1 %v801_v6  ;;  %v385_v22 = vadd.f32 %v934_v18, %v372_v20  ;;  %v376_v29 = vmul.f32 %v933_v16, %v813_v26  ;;  %v386_v33 = vadd.f32 %v934_v18, %v373_v30  ;;  %v462_v27 = vld [vmem:[#allocation2 + $0x20] sm:$0xff] }
  0x2c   : > { %446 = vperm.xlu1 %931, %v408_v7   ;;  %436 = vperm.xlu0 %930, %v406_v8   ;;  %v391_v31 = vadd.f32 %v934_v18, %v378_v28  ;;  %v377_v38 = vmul.f32 %v933_v16, %v814_v36  ;;  %v392_v39 = vadd.f32 %v934_v18, %v379_v37  ;;  %v464_v28 = vld [vmem:[#allocation2 + $0x38] sm:$0xff] }
  0x2d   : > { %538 = vmatpush.bf16.msra.mxu0 %v800_v9  ;;  %v389_v32 = vadd.f32 %v934_v18, %v376_v29  ;;  %v375_v45 = vmul.f32 %v933_v16, %v810_v42  ;;  %v374_v46 = vmul.f32 %v933_v16, %v809_v43  ;;  %v393_v47 = vmax.f32 %v385_v22, 0.0  ;;  %v459_v22 = vld [vmem:[#allocation2 + $0x18] sm:$0xff] }
  0x2e   : > { %416 = vperm.xlu2 %932, %v402_v10   ;;  %871 = vmatpush.bf16.msra.mxu2 %v800_v9  ;;  %v390_v40 = vadd.f32 %v934_v18, %v377_v38  ;;  %v394_v50 = vmax.f32 %v386_v33, 0.0  ;;  %v399_v57 = vmax.f32 %v391_v31, 0.0  ;;  %v400_v59 = vmax.f32 %v392_v39, 0.0  ;;  %v460_v31 = vld [vmem:[#allocation2 + $0x10] sm:$0xff] }
  0x2f   : > { %872 = vmatpush.bf16.msra.mxu3 %v800_v9  ;;  %870 = vmatpush.bf16.msra.mxu1 %v800_v9  ;;  %v388_v48 = vadd.f32 %v934_v18, %v375_v45  ;;  %v387_v49 = vadd.f32 %v934_v18, %v374_v46  ;;  %v397_v58 = vmax.f32 %v389_v32, 0.0  ;;  %v461_v18 = vld [vmem:[#allocation2 + $0x8] sm:$0xff] }
  0x30   : > { %v398_v60 = vmax.f32 %v390_v40, 0.0 }
  0x31   : > { %539 = vmatpush.bf16.msra.mxu0 %v799_v11  ;;  %v396_v5 = vmax.f32 %v388_v48, 0.0  ;;  %v395_v6 = vmax.f32 %v387_v49, 0.0 }
  0x32   : > { %874 = vmatpush.bf16.msra.mxu2 %v799_v11 }
  0x33   : > { %875 = vmatpush.bf16.msra.mxu3 %v799_v11  ;;  %873 = vmatpush.bf16.msra.mxu1 %v799_v11 }
  0x34   : > { %426 = vperm.xlu1 %931, %v404_v12   ;;  %421 = vperm.xlu0 %930, %v403_v13   ;;  %v457_v12 = vld [vmem:[#allocation2 + $0x30] sm:$0xff] }
  0x35   : > { %540 = vmatpush.bf16.msra.mxu0 %v798_v14 }
  0x36   : > { %877 = vmatpush.bf16.msra.mxu2 %v798_v14 }
  0x37   : > { %878 = vmatpush.bf16.msra.mxu3 %v798_v14  ;;  %876 = vmatpush.bf16.msra.mxu1 %v798_v14 }
  0x39   : > { %541 = vmatpush.bf16.msra.mxu0 %v797_v19 }
  0x3a   : > { %880 = vmatpush.bf16.msra.mxu2 %v797_v19 }
  0x3b   : > { %881 = vmatpush.bf16.msra.mxu3 %v797_v19  ;;  %879 = vmatpush.bf16.msra.mxu1 %v797_v19  ;;  %v463_v19 = vld [vmem:[#allocation2 + $0x28] sm:$0xff] }
  0x3d   : > { %542 = vmatpush.bf16.msra.mxu0 %v796_v21 }
  0x3e   : > { %883 = vmatpush.bf16.msra.mxu2 %v796_v21 }
  0x3f   : > { %884 = vmatpush.bf16.msra.mxu3 %v796_v21  ;;  %882 = vmatpush.bf16.msra.mxu1 %v796_v21 }
  0x41   : > { %543 = vmatpush.bf16.msra.mxu0 %v795_v34 }
  0x42   : > { %886 = vmatpush.bf16.msra.mxu2 %v795_v34 }
  0x43   : > { %887 = vmatpush.bf16.msra.mxu3 %v795_v34  ;;  %885 = vmatpush.bf16.msra.mxu1 %v795_v34 }
  0x80   : > { %v412_v44 = vpop.permute.xlu2 %411 }
  0x81   : > { %v449_v51 = vmul.f32 %v412_v44, %v393_v47 }
  0x88   : > { %v417_v52 = vpop.permute.xlu2 %416 }
  0x89   : > { %v450_v53 = vmul.f32 %v417_v52, %v394_v50 }
  0x8b   : > { %v465_v54 = vpack.c.bf16 %v450_v53, %v449_v51 }
  0x8d   : > { %544 = vmatmul.bf16.vlgmr.msra.gmra.mxu0 %v465_v54 }
  0x96   : > { %v442_v55 = vpop.permute.xlu1 %441  ;;  %v432_v56 = vpop.permute.xlu0 %431 }
  0x97   : > { %v455_v63 = vmul.f32 %v442_v55, %v399_v57  ;;  %v453_v0 = vmul.f32 %v432_v56, %v397_v58 }
  0x9e   : > { %v447_v61 = vpop.permute.xlu1 %446  ;;  %v437_v62 = vpop.permute.xlu0 %436 }
  0x9f   : > { %v456_v1 = vmul.f32 %v447_v61, %v400_v59  ;;  %v454_v2 = vmul.f32 %v437_v62, %v398_v60 }
  0xa1   : > { %v467_v3 = vpack.c.bf16 %v454_v2, %v453_v0  ;;  %v468_v4 = vpack.c.bf16 %v456_v1, %v455_v63 }
  0xa3   : > { %554 = vmatmul.bf16.vlgmr.msra.gmra.mxu2 %v467_v3  ;;  %559 = vmatmul.bf16.vlgmr.msra.gmra.mxu3 %v468_v4 }
  0xa6   : > { %v427_v7 = vpop.permute.xlu1 %426  ;;  %v422_v8 = vpop.permute.xlu0 %421 }
  0xa7   : > { %v452_v9 = vmul.f32 %v427_v7, %v396_v5  ;;  %v451_v10 = vmul.f32 %v422_v8, %v395_v6 }
  0xa9   : > { %v466_v11 = vpack.c.bf16 %v452_v9, %v451_v10 }
  0xab   : > { %549 = vmatmul.bf16.vlgmr.msra.gmra.mxu1 %v466_v11 }
 0x10a   : > { %v545_v13 = vpop.f32.mrf.mxu0 }
 0x10b   : > { %v565_v14 = vadd.f32 %v545_v13, %v457_v12 }
 0x10d   : > { %573 = vst [vmem:[#allocation2 + $0x30] sm:$0xff] %v565_v14 }
 0x112   : > { %v547_v16 = vpop.f32.mrf.mxu0 }
 0x113   : > { %v566_v17 = vadd.f32 %v547_v16, %v458_v15 }
 0x115   : > { %574 = vst [vmem:[#allocation2] sm:$0xff] %v566_v17 }
 0x126   : > { %v555_v20 = vpop.f32.mrf.mxu2  ;;  %v560_v21 = vpop.f32.mrf.mxu3 }
 0x127   : > { %v569_v23 = vadd.f32 %v555_v20, %v461_v18  ;;  %v571_v24 = vadd.f32 %v560_v21, %v463_v19 }
 0x128   : > { %v550_v25 = vpop.f32.mrf.mxu1 }
 0x129   : > { %577 = vst [vmem:[#allocation2 + $0x8] sm:$0xff] %v569_v23  ;;  %v567_v26 = vadd.f32 %v550_v25, %v459_v22 }
 0x12a   : > { %579 = vst [vmem:[#allocation2 + $0x28] sm:$0xff] %v571_v24 }
 0x12b   : > { %575 = vst [vmem:[#allocation2 + $0x18] sm:$0xff] %v567_v26 }
 0x12e   : > { %v557_v29 = vpop.f32.mrf.mxu2  ;;  %v562_v30 = vpop.f32.mrf.mxu3 }
 0x12f   : > { %v570_v32 = vadd.f32 %v557_v29, %v462_v27  ;;  %v572_v33 = vadd.f32 %v562_v30, %v464_v28  ;;  %584 = sbr.rel (%p791_p8) target bundleno = 320 (0x140), region = 52 }
 0x130   : > { %v552_v34 = vpop.f32.mrf.mxu1 }
 0x131   : > { %578 = vst [vmem:[#allocation2 + $0x20] sm:$0xff] %v570_v32  ;;  %v568_v35 = vadd.f32 %v552_v34, %v460_v31 }
 0x132   : > { %580 = vst [vmem:[#allocation2 + $0x38] sm:$0xff] %v572_v33 }
 0x133   : > { %576 = vst [vmem:[#allocation2 + $0x10] sm:$0xff] %v568_v35 }
 0x134   : > { %v585_v36 = vld [vmem:[#allocation2 + $0x30] sm:$0xff]  ;;  %v586_v37 = vld [vmem:[#allocation2] sm:$0xff]  ;;  %v587_v41 = vld [vmem:[#allocation2 + $0x18] sm:$0xff] }
 0x135   : > { %v820_v38 = vld [vmem:[%s1059_s19] sm:$0xff]   ;;  %v858_v43 = vld [vmem:[%s1059_s19 + $0x8] sm:$0xff]   ;;  %v859_v48 = vld [vmem:[%s1059_s19 + $0x10] sm:$0xff]  }
 0x136   : > { %v821_v39 = vunpack.c.l.bf16 %v820_v38  ;;  %v822_v40 = vunpack.c.h.bf16 %v820_v38  ;;  %v825_v44 = vunpack.c.l.bf16 %v858_v43  ;;  %v826_v45 = vunpack.c.h.bf16 %v858_v43  ;;  %v589_v46 = vld [vmem:[#allocation2 + $0x8] sm:$0xff]  ;;  %v860_v55 = vld [vmem:[%s1059_s19 + $0x18] sm:$0xff]  }
 0x137   : > { %v829_v51 = vunpack.c.l.bf16 %v859_v48  ;;  %v830_v52 = vunpack.c.h.bf16 %v859_v48  ;;  %v591_v53 = vld [vmem:[#allocation2 + $0x28] sm:$0xff]  ;;  %v833_v58 = vunpack.c.l.bf16 %v860_v55  ;;  %v834_v59 = vunpack.c.h.bf16 %v860_v55 }
 0x138   : > { %v590_v47 = vld [vmem:[#allocation2 + $0x20] sm:$0xff]  ;;  %v609_v49 = vadd.f32 %v821_v39, %v585_v36  ;;  %v610_v50 = vadd.f32 %v822_v40, %v586_v37  ;;  %v611_v56 = vadd.f32 %v825_v44, %v587_v41 }
 0x139   : > { %v592_v54 = vld [vmem:[#allocation2 + $0x38] sm:$0xff]  ;;  %v613_v61 = vadd.f32 %v829_v51, %v589_v46  ;;  %v614_v62 = vadd.f32 %v830_v52, %v590_v47  ;;  %v615_v0 = vadd.f32 %v833_v58, %v591_v53 }
 0x13a   : > { %v588_v42 = vld [vmem:[#allocation2 + $0x10] sm:$0xff]  ;;  %v838_v60 = vpack.c.bf16 %v610_v50, %v609_v49  ;;  %v616_v1 = vadd.f32 %v834_v59, %v592_v54 }
 0x13b   : > { %v612_v57 = vadd.f32 %v826_v45, %v588_v42  ;;  %v848_v2 = vpack.c.bf16 %v614_v62, %v613_v61 }
 0x13c   : > { %839 = vst [vmem:[%s1064_s28] sm:$0xff] %v838_v60   ;;  %v853_v3 = vpack.c.bf16 %v616_v1, %v615_v0 }
 0x13d   : > { %v843_v63 = vpack.c.bf16 %v612_v57, %v611_v56  ;;  %862 = vst [vmem:[%s1064_s28 + $0x10] sm:$0xff] %v848_v2  }
 0x13e   : > { %863 = vst [vmem:[%s1064_s28 + $0x18] sm:$0xff] %v853_v3  }
 0x13f   : > { %861 = vst [vmem:[%s1064_s28 + $0x8] sm:$0xff] %v843_v63  }
 0x140 PF: > { %s16_s25 = sadd.s32 1, %s973_s25   ;;  %s1142_s21 = smov %s965_s23 }
 0x141   : > { %p13_p9 = scmp.ge.s32.totalorder %s16_s25, 20   ;;  %s1143_s22 = smov %s969_s24 }
 0x142   : > { %s1144_s23 = smov %s1147_s26  ;;  %s1145_s24 = smov %s1151_s27 }
 0x143   :  { %15 = sbr.rel (!%p13_p9) target bundleno = 3 (0x3), region = 91 }

</bundles_post_ra>
